<compile_context>
chip_gen: v7x
topology: tpu7x:2x2x1
jax: 0.10.0
libtpu: 0.0.40
codegen_flags: <defaults>
</compile_context>

<pallas_src>
import functools

import jax
import jax.numpy as jnp
from jax.experimental import pallas as pl
from jax.experimental.pallas import tpu as pltpu

_SQRT2 = 1.4142135623730951


def _gelu(x):
    # exact erf-based GELU, matching torch.nn.GELU() default.
    # (tanh-approx GELU would move this to the EUP slot, but diverges slightly.)
    return 0.5 * x * (1.0 + jax.lax.erf(x / _SQRT2))


# ------------------------------ fused kernel ------------------------------- #

def _mieb_kernel(x_ref, w3_ref, wcc_ref, vec_ref, o_ref, *, H, W, C, K, eps):
    cm = C // 3
    HW = H * W
    p = K // 2
    f32 = jnp.float32

    # ---- packed weights, loaded once per grid step -------------------------
    vec = vec_ref[...].astype(f32)                    # (C, 12 + cm + K*K)
    (B1, B2, B3, B4, LNG, LNB, RB1A, RB1B, RB2, BSCA, RB3, BETA) = range(12)

    def vcol(j, rows=C):                              # (rows, 1) column slice
        return vec[:rows, j:j + 1]

    fw1 = vec[:cm, 12:12 + cm]                        # (cm, cm)  branch-1 1x1
    dww = vec[:, 12 + cm:12 + cm + K * K]             # (C, K*K)  depthwise taps
    w3b1 = w3_ref[0].astype(f32)                      # (cm, 9*cm) im2col weights
    w3b2 = w3_ref[1].astype(f32)
    w3b3 = w3_ref[2].astype(f32)
    w1a = wcc_ref[0].astype(f32)                      # (C, C) RKAB conv1, x1 half
    w1b = wcc_ref[1].astype(f32)                      # (C, C) RKAB conv1, x2 half
    wsc = wcc_ref[2].astype(f32)                      # (C, C) sca 1x1
    w3o = wcc_ref[3].astype(f32)                      # (C, C) RKAB conv3

    # ---- flat (row, col) coordinates for zero-pad border masks -------------
    # (float math: avoids vector integer div/mod; exact for these magnitudes)
    lane = jax.lax.broadcasted_iota(jnp.int32, (1, HW), 1).astype(f32)
    rowf = jnp.floor(lane / float(W))
    colf = lane - rowf * float(W)
    mask_cache = {}

    def _mask(dh, dw):
        key = (dh, dw)
        if key not in mask_cache:
            conds = []
            if dh < 0:
                conds.append(rowf >= float(-dh))
            if dh > 0:
                conds.append(rowf <= float(H - 1 - dh))
            if dw < 0:
                conds.append(colf >= float(-dw))
            if dw > 0:
                conds.append(colf <= float(W - 1 - dw))
            if not conds:
                mask_cache[key] = None
            else:
                m = conds[0]
                for c in conds[1:]:
                    m = jnp.logical_and(m, c)
                mask_cache[key] = m.astype(f32)        # (1, HW) in {0, 1}
        return mask_cache[key]

    def shift2d(z, dh, dw):
        """z[:, (h, w)] -> z[:, (h+dh, w+dw)] with zero 'same' padding."""
        s = dh * W + dw
        if s:
            z = pltpu.roll(z, shift=(-s) % HW, axis=1)   # XLU lane rotate
        m = _mask(dh, dw)
        return z if m is None else z * m                 # (1,HW) bcast over rows

    def conv3x3_gelu(z, w, b_col):
        # z: (cm, HW); w: (cm, 9*cm) tap-major / ci-minor; one im2col matmul.
        patches = jnp.concatenate(
            [shift2d(z, dh, dw) for dh in (-1, 0, 1) for dw in (-1, 0, 1)],
            axis=0)                                       # (9*cm, HW), sublane concat
        y = jnp.dot(w, patches, preferred_element_type=f32) + b_col
        return _gelu(y)

    for b in range(x_ref.shape[0]):                       # unrolled batch block
        x = x_ref[b].astype(f32)                          # (C, HW), C on sublanes

        # ------------------------- MIEB branches ----------------------------
        c1 = _gelu(jnp.dot(fw1, x[0:cm, :], preferred_element_type=f32)
                   + vcol(B1, cm))
        c2 = conv3x3_gelu(x[cm:2 * cm, :], w3b1, vcol(B2, cm))
        c2 = conv3x3_gelu(c2, w3b2, vcol(B3, cm))          # stays in VMEM/vregs
        c3 = conv3x3_gelu(x[2 * cm:, :], w3b3, vcol(B4, cm))
        cat = jnp.concatenate([c1, c2, c3], axis=0)        # (C, HW)

        # ------------------------------ RKAB ---------------------------------
        # LayerNorm2d over channels (sublane reduce), biased variance.
        mu = jnp.mean(cat, axis=0, keepdims=True)          # (1, HW)
        var = jnp.mean((cat - mu) ** 2, axis=0, keepdims=True)
        xn = (cat - mu) * jax.lax.rsqrt(var + eps)
        xn = vcol(LNG) * xn + vcol(LNB)

        # conv1 (1x1, C -> 2C), pre-split into the two chunk() halves.
        x1 = jnp.dot(w1a, xn, preferred_element_type=f32) + vcol(RB1A)
        x2 = jnp.dot(w1b, xn, preferred_element_type=f32) + vcol(RB1B)

        # conv2: depthwise KxK on x2 (roll + mask taps), then gate with x1.
        acc = None
        for dh in range(-p, p + 1):
            for dw in range(-p, p + 1):
                t = (dh + p) * K + (dw + p)
                term = dww[:, t:t + 1] * shift2d(x2, dh, dw)
                acc = term if acc is None else acc + term
        g = (acc + vcol(RB2)) * x1                          # (C, HW)

        # sca: global-average-pool + 1x1 conv.  mean(W @ g) == W @ mean(g);
        # reuses the (C,C)@(C,HW) matmul shape, extra FLOPs are negligible.
        scale = jnp.mean(jnp.dot(wsc, g, preferred_element_type=f32),
                         axis=1, keepdims=True) + vcol(BSCA)   # (C, 1)
        xs = g * scale

        # conv3 (1x1) + residual:  out = cat + (w3 @ xs + b3) * beta
        y = jnp.dot(w3o, xs, preferred_element_type=f32) + vcol(RB3)
        o_ref[b] = (cat + y * vcol(BETA)).astype(o_ref.dtype)


# -------------------------- host-side weight packing ------------------------ #

def _pack_weights(params, C, K):
    """Repack PyTorch-layout weights into 3 kernel-friendly arrays."""
    cm = C // 3
    lka = params["lka"]

    def im2col_w(w):  # torch (Cout, Cin, 3, 3) -> (Cout, 9*Cin), tap-major/ci-minor
        return jnp.transpose(w, (0, 2, 3, 1)).reshape(cm, 9 * cm)

    w3x3 = jnp.stack([im2col_w(params["w2"]),
                      im2col_w(params["w3"]),
                      im2col_w(params["w4"])])                     # (3, cm, 9cm)

    rw1 = lka["w1"].reshape(2 * C, C)                              # (2C,C,1,1)
    wcc = jnp.stack([rw1[:C], rw1[C:],                             # chunk() halves
                     lka["w_sca"].reshape(C, C),
                     lka["w3"].reshape(C, C)])                     # (4, C, C)

    def pad_c(v):
        v = v.reshape(-1)
        return jnp.pad(v, (0, C - v.shape[0]))

    fw1 = params["w1"].reshape(cm, cm)                             # (cm,cm,1,1)
    dw = lka["w2"].reshape(C, K * K)                               # (C,1,K,K)
    rb1 = lka["b1"].reshape(2 * C)
    cols = [pad_c(params["b1"]), pad_c(params["b2"]),
            pad_c(params["b3"]), pad_c(params["b4"]),
            lka["ln_g"].reshape(C), lka["ln_b"].reshape(C),
            rb1[:C], rb1[C:],
            lka["b2"].reshape(C), lka["b_sca"].reshape(C),
            lka["b3"].reshape(C), lka["beta"].reshape(C)]
    cols += [pad_c(fw1[:, j]) for j in range(cm)]                  # branch-1 1x1
    cols += [dw[:, t] for t in range(K * K)]                       # depthwise taps
    wvec = jnp.stack(cols, axis=1)                                 # (C, 12+cm+K*K)
    return w3x3, wcc, wvec


# ------------------------------ call wrapper ------------------------------- #

def mieb_forward(x_nchw, params, K, *, batch_block=1):
    N, C, H, W = x_nchw.shape
    assert C % 3 == 0, "MIEB requires in_channels divisible by 3"
    assert K % 2 == 1, "depthwise 'same' padding assumes odd kernel size"
    assert N % batch_block == 0
    HW = H * W
    nb = batch_block            # set to N on single-TC chips (v5e/v6e) to fold
                                # the whole batch into one grid step

    x2d = x_nchw.reshape(N, C, HW)          # flattened NCHW: lanes = H*W
    w3x3, wcc, wvec = _pack_weights(params, C, K)

    def whole(a):
        nd = a.ndim
        return pl.BlockSpec(a.shape, lambda n, nd=nd: (0,) * nd)

    out2d = pl.pallas_call(
        functools.partial(_mieb_kernel, H=H, W=W, C=C, K=K, eps=1e-6),
        grid=(N // nb,),
        out_shape=jax.ShapeDtypeStruct((N, C, HW), x_nchw.dtype),
        in_specs=[pl.BlockSpec((nb, C, HW), lambda n: (n, 0, 0)),
                  whole(w3x3), whole(wcc), whole(wvec)],
        out_specs=pl.BlockSpec((nb, C, HW), lambda n: (n, 0, 0)),
        compiler_params=pltpu.CompilerParams(
            dimension_semantics=("parallel",),   # v7x: shard batch over 2 TCs
            vmem_limit_bytes=32 * 1024 * 1024,   # >= defaults, << v7x 64 MiB
        ),
    )(x2d, w3x3, wcc, wvec)

    return out2d.reshape(N, C, H, W)


# ------------------------------ parameter init ----------------------------- #
# Parameters use the PyTorch tensor layouts; _pack_weights does the permutes.

def _randn(key, shape, scale=0.1):
    return scale * jax.random.normal(key, shape, dtype=jnp.float32)


def init_rkab(key, c, K):
    ks = jax.random.split(key, 11)
    return dict(
        ln_g=_randn(ks[0], (c,)) + 1.0,                              # LN weight
        ln_b=_randn(ks[1], (c,)),                                    # LN bias
        w1=_randn(ks[2], (2 * c, c, 1, 1)), b1=_randn(ks[3], (2 * c,)),
        w2=_randn(ks[4], (c, 1, K, K)), b2=_randn(ks[5], (c,)),      # depthwise
        w_sca=_randn(ks[6], (c, c, 1, 1)), b_sca=_randn(ks[7], (c,)),
        w3=_randn(ks[8], (c, c, 1, 1)), b3=_randn(ks[9], (c,)),
        beta=_randn(ks[10], (1, c, 1, 1)),   # nonzero so the residual path matters
    )


def init_mieb(key, C, K):
    cm = C // 3
    ks = jax.random.split(key, 9)
    return dict(
        w1=_randn(ks[0], (cm, cm, 1, 1)), b1=_randn(ks[1], (cm,)),
        w2=_randn(ks[2], (cm, cm, 3, 3)), b2=_randn(ks[3], (cm,)),
        w3=_randn(ks[4], (cm, cm, 3, 3)), b3=_randn(ks[5], (cm,)),
        w4=_randn(ks[6], (cm, cm, 3, 3)), b4=_randn(ks[7], (cm,)),
        lka=init_rkab(ks[8], C, K),
    )


# ----------------------------------- main ----------------------------------- #

if __name__ == "__main__":
    key = jax.random.PRNGKey(0)
    kx, kp = jax.random.split(key)

    N, C, H, W = 2, 12, 16, 16      # in_channels must be divisible by 3
    kel_nel = 3

    x = jax.random.normal(kx, (N, C, H, W), dtype=jnp.float32)   # NCHW like torch
    params = init_mieb(kp, C, kel_nel)

    fwd = jax.jit(functools.partial(mieb_forward, K=kel_nel))
    out = fwd(x, params)
    jax.block_until_ready(out)

    assert out.shape == (N, C, H, W)
    assert out.dtype == jnp.float32
    assert bool(jnp.all(jnp.isfinite(out)))
    print("KERNEL_OK")
</pallas_src>

<mosaic_0001>
module attributes {stable_mosaic.version = 11 : i64} {
  func.func @_mieb_kernel(%arg0: i32, %arg1: memref<1x12x256xf32, #tpu.memory_space<vmem>>, %arg2: memref<3x4x36xf32, #tpu.memory_space<vmem>>, %arg3: memref<4x12x12xf32, #tpu.memory_space<vmem>>, %arg4: memref<12x25xf32, #tpu.memory_space<vmem>>, %arg5: memref<1x12x256xf32, #tpu.memory_space<vmem>>) attributes {dimension_semantics = [#tpu.dimension_semantics<parallel>], iteration_bounds = array<i64: 2>, scalar_prefetch = 0 : i64, scratch_operands = 0 : i64, tpu.core_type = #tpu.core_type<tc>, window_params = [{transform_indices = @transform_0, window_bounds = array<i64: 1, 12, 256>}, {pipeline_mode = #tpu.pipeline_mode<synchronous>, transform_indices = @transform_1, window_bounds = array<i64: 3, 4, 36>}, {pipeline_mode = #tpu.pipeline_mode<synchronous>, transform_indices = @transform_2, window_bounds = array<i64: 4, 12, 12>}, {pipeline_mode = #tpu.pipeline_mode<synchronous>, transform_indices = @transform_3, window_bounds = array<i64: 12, 25>}, {transform_indices = @transform_4, window_bounds = array<i64: 1, 12, 256>}]} {
    %c0 = arith.constant 0 : index
    %c0_0 = arith.constant 0 : index
    %0 = vector.load %arg4[%c0, %c0_0] : memref<12x25xf32, #tpu.memory_space<vmem>>, vector<12x25xf32>
    %1 = vector.extract_strided_slice %0 {offsets = [0, 12], sizes = [4, 4], strides = [1, 1]} : vector<12x25xf32> to vector<4x4xf32>
    %2 = vector.extract_strided_slice %0 {offsets = [0, 16], sizes = [12, 9], strides = [1, 1]} : vector<12x25xf32> to vector<12x9xf32>
    %c0_1 = arith.constant 0 : index
    %c0_2 = arith.constant 0 : index
    %c0_3 = arith.constant 0 : index
    %3 = vector.load %arg2[%c0_1, %c0_2, %c0_3] : memref<3x4x36xf32, #tpu.memory_space<vmem>>, vector<1x4x36xf32>
    %4 = vector.shape_cast %3 : vector<1x4x36xf32> to vector<4x36xf32>
    %c1 = arith.constant 1 : index
    %c0_4 = arith.constant 0 : index
    %c0_5 = arith.constant 0 : index
    %5 = vector.load %arg2[%c1, %c0_4, %c0_5] : memref<3x4x36xf32, #tpu.memory_space<vmem>>, vector<1x4x36xf32>
    %6 = vector.shape_cast %5 : vector<1x4x36xf32> to vector<4x36xf32>
    %c2 = arith.constant 2 : index
    %c0_6 = arith.constant 0 : index
    %c0_7 = arith.constant 0 : index
    %7 = vector.load %arg2[%c2, %c0_6, %c0_7] : memref<3x4x36xf32, #tpu.memory_space<vmem>>, vector<1x4x36xf32>
    %8 = vector.shape_cast %7 : vector<1x4x36xf32> to vector<4x36xf32>
    %c0_8 = arith.constant 0 : index
    %c0_9 = arith.constant 0 : index
    %c0_10 = arith.constant 0 : index
    %9 = vector.load %arg3[%c0_8, %c0_9, %c0_10] : memref<4x12x12xf32, #tpu.memory_space<vmem>>, vector<1x12x12xf32>
    %10 = vector.shape_cast %9 : vector<1x12x12xf32> to vector<12x12xf32>
    %c1_11 = arith.constant 1 : index
    %c0_12 = arith.constant 0 : index
    %c0_13 = arith.constant 0 : index
    %11 = vector.load %arg3[%c1_11, %c0_12, %c0_13] : memref<4x12x12xf32, #tpu.memory_space<vmem>>, vector<1x12x12xf32>
    %12 = vector.shape_cast %11 : vector<1x12x12xf32> to vector<12x12xf32>
    %c2_14 = arith.constant 2 : index
    %c0_15 = arith.constant 0 : index
    %c0_16 = arith.constant 0 : index
    %13 = vector.load %arg3[%c2_14, %c0_15, %c0_16] : memref<4x12x12xf32, #tpu.memory_space<vmem>>, vector<1x12x12xf32>
    %14 = vector.shape_cast %13 : vector<1x12x12xf32> to vector<12x12xf32>
    %c3 = arith.constant 3 : index
    %c0_17 = arith.constant 0 : index
    %c0_18 = arith.constant 0 : index
    %15 = vector.load %arg3[%c3, %c0_17, %c0_18] : memref<4x12x12xf32, #tpu.memory_space<vmem>>, vector<1x12x12xf32>
    %16 = vector.shape_cast %15 : vector<1x12x12xf32> to vector<12x12xf32>
    %17 = tpu.iota {dimensions = array<i32: 1>} : vector<1x256xi32>
    %18 = arith.sitofp %17 : vector<1x256xi32> to vector<1x256xf32>
    %cst = arith.constant 1.600000e+01 : f32
    %19 = vector.broadcast %cst : f32 to vector<1x256xf32>
    %20 = arith.divf %18, %19 : vector<1x256xf32>
    %21 = math.floor %20 : vector<1x256xf32>
    %cst_19 = arith.constant 1.600000e+01 : f32
    %22 = vector.broadcast %cst_19 : f32 to vector<1x256xf32>
    %23 = arith.mulf %21, %22 : vector<1x256xf32>
    %24 = arith.subf %18, %23 : vector<1x256xf32>
    %c0_20 = arith.constant 0 : index
    %c0_21 = arith.constant 0 : index
    %c0_22 = arith.constant 0 : index
    %25 = vector.load %arg1[%c0_20, %c0_21, %c0_22] : memref<1x12x256xf32, #tpu.memory_space<vmem>>, vector<1x12x256xf32>
    %26 = vector.shape_cast %25 : vector<1x12x256xf32> to vector<12x256xf32>
    %27 = vector.extract_strided_slice %26 {offsets = [0, 0], sizes = [4, 256], strides = [1, 1]} : vector<12x256xf32> to vector<4x256xf32>
    %cst_23 = arith.constant dense<0.000000e+00> : vector<4x256xf32>
    %28 = tpu.matmul %1, %27, %cst_23 {dimension_numbers = #tpu.dot_dimension_numbers<[1], [0], [0], [1], [0, 0, 1, 1], [], []>} : vector<4x4xf32>, vector<4x256xf32>, vector<4x256xf32> -> vector<4x256xf32>
    %29 = vector.extract_strided_slice %0 {offsets = [0, 0], sizes = [4, 1], strides = [1, 1]} : vector<12x25xf32> to vector<4x1xf32>
    %30 = vector.broadcast %29 : vector<4x1xf32> to vector<4x256xf32>
    %31 = arith.addf %28, %30 : vector<4x256xf32>
    %cst_24 = arith.constant 5.000000e-01 : f32
    %32 = vector.broadcast %cst_24 : f32 to vector<4x256xf32>
    %33 = arith.mulf %32, %31 : vector<4x256xf32>
    %cst_25 = arith.constant 1.41421354 : f32
    %34 = vector.broadcast %cst_25 : f32 to vector<4x256xf32>
    %35 = arith.divf %31, %34 : vector<4x256xf32>
    %36 = math.erf %35 : vector<4x256xf32>
    %cst_26 = arith.constant 1.000000e+00 : f32
    %37 = vector.broadcast %cst_26 : f32 to vector<4x256xf32>
    %38 = arith.addf %37, %36 : vector<4x256xf32>
    %39 = arith.mulf %33, %38 : vector<4x256xf32>
    %40 = vector.extract_strided_slice %26 {offsets = [4, 0], sizes = [4, 256], strides = [1, 1]} : vector<12x256xf32> to vector<4x256xf32>
    %41 = vector.extract_strided_slice %0 {offsets = [0, 1], sizes = [4, 1], strides = [1, 1]} : vector<12x25xf32> to vector<4x1xf32>
    %c17_i32 = arith.constant 17 : i32
    %42 = tpu.dynamic_rotate %40 by %c17_i32 dim 1 : vector<4x256xf32>, i32 -> vector<4x256xf32>
    %cst_27 = arith.constant 1.000000e+00 : f32
    %43 = vector.broadcast %cst_27 : f32 to vector<1x256xf32>
    %44 = arith.cmpf oge, %21, %43 : vector<1x256xf32>
    %cst_28 = arith.constant 1.000000e+00 : f32
    %45 = vector.broadcast %cst_28 : f32 to vector<1x256xf32>
    %46 = arith.cmpf oge, %24, %45 : vector<1x256xf32>
    %47 = arith.andi %44, %46 : vector<1x256xi1>
    %48 = arith.extui %47 : vector<1x256xi1> to vector<1x256xi32>
    %49 = arith.sitofp %48 : vector<1x256xi32> to vector<1x256xf32>
    %50 = vector.broadcast %49 : vector<1x256xf32> to vector<4x256xf32>
    %51 = arith.mulf %42, %50 : vector<4x256xf32>
    %c16_i32 = arith.constant 16 : i32
    %52 = tpu.dynamic_rotate %40 by %c16_i32 dim 1 : vector<4x256xf32>, i32 -> vector<4x256xf32>
    %cst_29 = arith.constant 1.000000e+00 : f32
    %53 = vector.broadcast %cst_29 : f32 to vector<1x256xf32>
    %54 = arith.cmpf oge, %21, %53 : vector<1x256xf32>
    %55 = arith.extui %54 : vector<1x256xi1> to vector<1x256xi32>
    %56 = arith.sitofp %55 : vector<1x256xi32> to vector<1x256xf32>
    %57 = vector.broadcast %56 : vector<1x256xf32> to vector<4x256xf32>
    %58 = arith.mulf %52, %57 : vector<4x256xf32>
    %c15_i32 = arith.constant 15 : i32
    %59 = tpu.dynamic_rotate %40 by %c15_i32 dim 1 : vector<4x256xf32>, i32 -> vector<4x256xf32>
    %cst_30 = arith.constant 1.000000e+00 : f32
    %60 = vector.broadcast %cst_30 : f32 to vector<1x256xf32>
    %61 = arith.cmpf oge, %21, %60 : vector<1x256xf32>
    %cst_31 = arith.constant 1.400000e+01 : f32
    %62 = vector.broadcast %cst_31 : f32 to vector<1x256xf32>
    %63 = arith.cmpf ole, %24, %62 : vector<1x256xf32>
    %64 = arith.andi %61, %63 : vector<1x256xi1>
    %65 = arith.extui %64 : vector<1x256xi1> to vector<1x256xi32>
    %66 = arith.sitofp %65 : vector<1x256xi32> to vector<1x256xf32>
    %67 = vector.broadcast %66 : vector<1x256xf32> to vector<4x256xf32>
    %68 = arith.mulf %59, %67 : vector<4x256xf32>
    %c1_i32 = arith.constant 1 : i32
    %69 = tpu.dynamic_rotate %40 by %c1_i32 dim 1 : vector<4x256xf32>, i32 -> vector<4x256xf32>
    %cst_32 = arith.constant 1.000000e+00 : f32
    %70 = vector.broadcast %cst_32 : f32 to vector<1x256xf32>
    %71 = arith.cmpf oge, %24, %70 : vector<1x256xf32>
    %72 = arith.extui %71 : vector<1x256xi1> to vector<1x256xi32>
    %73 = arith.sitofp %72 : vector<1x256xi32> to vector<1x256xf32>
    %74 = vector.broadcast %73 : vector<1x256xf32> to vector<4x256xf32>
    %75 = arith.mulf %69, %74 : vector<4x256xf32>
    %c255_i32 = arith.constant 255 : i32
    %76 = tpu.dynamic_rotate %40 by %c255_i32 dim 1 : vector<4x256xf32>, i32 -> vector<4x256xf32>
    %cst_33 = arith.constant 1.400000e+01 : f32
    %77 = vector.broadcast %cst_33 : f32 to vector<1x256xf32>
    %78 = arith.cmpf ole, %24, %77 : vector<1x256xf32>
    %79 = arith.extui %78 : vector<1x256xi1> to vector<1x256xi32>
    %80 = arith.sitofp %79 : vector<1x256xi32> to vector<1x256xf32>
    %81 = vector.broadcast %80 : vector<1x256xf32> to vector<4x256xf32>
    %82 = arith.mulf %76, %81 : vector<4x256xf32>
    %c241_i32 = arith.constant 241 : i32
    %83 = tpu.dynamic_rotate %40 by %c241_i32 dim 1 : vector<4x256xf32>, i32 -> vector<4x256xf32>
    %cst_34 = arith.constant 1.400000e+01 : f32
    %84 = vector.broadcast %cst_34 : f32 to vector<1x256xf32>
    %85 = arith.cmpf ole, %21, %84 : vector<1x256xf32>
    %cst_35 = arith.constant 1.000000e+00 : f32
    %86 = vector.broadcast %cst_35 : f32 to vector<1x256xf32>
    %87 = arith.cmpf oge, %24, %86 : vector<1x256xf32>
    %88 = arith.andi %85, %87 : vector<1x256xi1>
    %89 = arith.extui %88 : vector<1x256xi1> to vector<1x256xi32>
    %90 = arith.sitofp %89 : vector<1x256xi32> to vector<1x256xf32>
    %91 = vector.broadcast %90 : vector<1x256xf32> to vector<4x256xf32>
    %92 = arith.mulf %83, %91 : vector<4x256xf32>
    %c240_i32 = arith.constant 240 : i32
    %93 = tpu.dynamic_rotate %40 by %c240_i32 dim 1 : vector<4x256xf32>, i32 -> vector<4x256xf32>
    %cst_36 = arith.constant 1.400000e+01 : f32
    %94 = vector.broadcast %cst_36 : f32 to vector<1x256xf32>
    %95 = arith.cmpf ole, %21, %94 : vector<1x256xf32>
    %96 = arith.extui %95 : vector<1x256xi1> to vector<1x256xi32>
    %97 = arith.sitofp %96 : vector<1x256xi32> to vector<1x256xf32>
    %98 = vector.broadcast %97 : vector<1x256xf32> to vector<4x256xf32>
    %99 = arith.mulf %93, %98 : vector<4x256xf32>
    %c239_i32 = arith.constant 239 : i32
    %100 = tpu.dynamic_rotate %40 by %c239_i32 dim 1 : vector<4x256xf32>, i32 -> vector<4x256xf32>
    %cst_37 = arith.constant 1.400000e+01 : f32
    %101 = vector.broadcast %cst_37 : f32 to vector<1x256xf32>
    %102 = arith.cmpf ole, %21, %101 : vector<1x256xf32>
    %cst_38 = arith.constant 1.400000e+01 : f32
    %103 = vector.broadcast %cst_38 : f32 to vector<1x256xf32>
    %104 = arith.cmpf ole, %24, %103 : vector<1x256xf32>
    %105 = arith.andi %102, %104 : vector<1x256xi1>
    %106 = arith.extui %105 : vector<1x256xi1> to vector<1x256xi32>
    %107 = arith.sitofp %106 : vector<1x256xi32> to vector<1x256xf32>
    %108 = vector.broadcast %107 : vector<1x256xf32> to vector<4x256xf32>
    %109 = arith.mulf %100, %108 : vector<4x256xf32>
    %110 = tpu.concatenate %51, %58, %68, %75, %40, %82, %92, %99, %109 in 0 : vector<4x256xf32>, vector<4x256xf32>, vector<4x256xf32>, vector<4x256xf32>, vector<4x256xf32>, vector<4x256xf32>, vector<4x256xf32>, vector<4x256xf32>, vector<4x256xf32> -> vector<36x256xf32>
    %cst_39 = arith.constant dense<0.000000e+00> : vector<4x256xf32>
    %111 = tpu.matmul %4, %110, %cst_39 {dimension_numbers = #tpu.dot_dimension_numbers<[1], [0], [0], [1], [0, 0, 1, 1], [], []>} : vector<4x36xf32>, vector<36x256xf32>, vector<4x256xf32> -> vector<4x256xf32>
    %112 = vector.broadcast %41 : vector<4x1xf32> to vector<4x256xf32>
    %113 = arith.addf %111, %112 : vector<4x256xf32>
    %cst_40 = arith.constant 5.000000e-01 : f32
    %114 = vector.broadcast %cst_40 : f32 to vector<4x256xf32>
    %115 = arith.mulf %114, %113 : vector<4x256xf32>
    %cst_41 = arith.constant 1.41421354 : f32
    %116 = vector.broadcast %cst_41 : f32 to vector<4x256xf32>
    %117 = arith.divf %113, %116 : vector<4x256xf32>
    %118 = math.erf %117 : vector<4x256xf32>
    %cst_42 = arith.constant 1.000000e+00 : f32
    %119 = vector.broadcast %cst_42 : f32 to vector<4x256xf32>
    %120 = arith.addf %119, %118 : vector<4x256xf32>
    %121 = arith.mulf %115, %120 : vector<4x256xf32>
    %122 = vector.extract_strided_slice %0 {offsets = [0, 2], sizes = [4, 1], strides = [1, 1]} : vector<12x25xf32> to vector<4x1xf32>
    %c17_i32_43 = arith.constant 17 : i32
    %123 = tpu.dynamic_rotate %121 by %c17_i32_43 dim 1 : vector<4x256xf32>, i32 -> vector<4x256xf32>
    %124 = vector.broadcast %49 : vector<1x256xf32> to vector<4x256xf32>
    %125 = arith.mulf %123, %124 : vector<4x256xf32>
    %c16_i32_44 = arith.constant 16 : i32
    %126 = tpu.dynamic_rotate %121 by %c16_i32_44 dim 1 : vector<4x256xf32>, i32 -> vector<4x256xf32>
    %127 = vector.broadcast %56 : vector<1x256xf32> to vector<4x256xf32>
    %128 = arith.mulf %126, %127 : vector<4x256xf32>
    %c15_i32_45 = arith.constant 15 : i32
    %129 = tpu.dynamic_rotate %121 by %c15_i32_45 dim 1 : vector<4x256xf32>, i32 -> vector<4x256xf32>
    %130 = vector.broadcast %66 : vector<1x256xf32> to vector<4x256xf32>
    %131 = arith.mulf %129, %130 : vector<4x256xf32>
    %c1_i32_46 = arith.constant 1 : i32
    %132 = tpu.dynamic_rotate %121 by %c1_i32_46 dim 1 : vector<4x256xf32>, i32 -> vector<4x256xf32>
    %133 = vector.broadcast %73 : vector<1x256xf32> to vector<4x256xf32>
    %134 = arith.mulf %132, %133 : vector<4x256xf32>
    %c255_i32_47 = arith.constant 255 : i32
    %135 = tpu.dynamic_rotate %121 by %c255_i32_47 dim 1 : vector<4x256xf32>, i32 -> vector<4x256xf32>
    %136 = vector.broadcast %80 : vector<1x256xf32> to vector<4x256xf32>
    %137 = arith.mulf %135, %136 : vector<4x256xf32>
    %c241_i32_48 = arith.constant 241 : i32
    %138 = tpu.dynamic_rotate %121 by %c241_i32_48 dim 1 : vector<4x256xf32>, i32 -> vector<4x256xf32>
    %139 = vector.broadcast %90 : vector<1x256xf32> to vector<4x256xf32>
    %140 = arith.mulf %138, %139 : vector<4x256xf32>
    %c240_i32_49 = arith.constant 240 : i32
    %141 = tpu.dynamic_rotate %121 by %c240_i32_49 dim 1 : vector<4x256xf32>, i32 -> vector<4x256xf32>
    %142 = vector.broadcast %97 : vector<1x256xf32> to vector<4x256xf32>
    %143 = arith.mulf %141, %142 : vector<4x256xf32>
    %c239_i32_50 = arith.constant 239 : i32
    %144 = tpu.dynamic_rotate %121 by %c239_i32_50 dim 1 : vector<4x256xf32>, i32 -> vector<4x256xf32>
    %145 = vector.broadcast %107 : vector<1x256xf32> to vector<4x256xf32>
    %146 = arith.mulf %144, %145 : vector<4x256xf32>
    %147 = tpu.concatenate %125, %128, %131, %134, %121, %137, %140, %143, %146 in 0 : vector<4x256xf32>, vector<4x256xf32>, vector<4x256xf32>, vector<4x256xf32>, vector<4x256xf32>, vector<4x256xf32>, vector<4x256xf32>, vector<4x256xf32>, vector<4x256xf32> -> vector<36x256xf32>
    %cst_51 = arith.constant dense<0.000000e+00> : vector<4x256xf32>
    %148 = tpu.matmul %6, %147, %cst_51 {dimension_numbers = #tpu.dot_dimension_numbers<[1], [0], [0], [1], [0, 0, 1, 1], [], []>} : vector<4x36xf32>, vector<36x256xf32>, vector<4x256xf32> -> vector<4x256xf32>
    %149 = vector.broadcast %122 : vector<4x1xf32> to vector<4x256xf32>
    %150 = arith.addf %148, %149 : vector<4x256xf32>
    %cst_52 = arith.constant 5.000000e-01 : f32
    %151 = vector.broadcast %cst_52 : f32 to vector<4x256xf32>
    %152 = arith.mulf %151, %150 : vector<4x256xf32>
    %cst_53 = arith.constant 1.41421354 : f32
    %153 = vector.broadcast %cst_53 : f32 to vector<4x256xf32>
    %154 = arith.divf %150, %153 : vector<4x256xf32>
    %155 = math.erf %154 : vector<4x256xf32>
    %cst_54 = arith.constant 1.000000e+00 : f32
    %156 = vector.broadcast %cst_54 : f32 to vector<4x256xf32>
    %157 = arith.addf %156, %155 : vector<4x256xf32>
    %158 = arith.mulf %152, %157 : vector<4x256xf32>
    %159 = vector.extract_strided_slice %26 {offsets = [8, 0], sizes = [4, 256], strides = [1, 1]} : vector<12x256xf32> to vector<4x256xf32>
    %160 = vector.extract_strided_slice %0 {offsets = [0, 3], sizes = [4, 1], strides = [1, 1]} : vector<12x25xf32> to vector<4x1xf32>
    %c17_i32_55 = arith.constant 17 : i32
    %161 = tpu.dynamic_rotate %159 by %c17_i32_55 dim 1 : vector<4x256xf32>, i32 -> vector<4x256xf32>
    %162 = vector.broadcast %49 : vector<1x256xf32> to vector<4x256xf32>
    %163 = arith.mulf %161, %162 : vector<4x256xf32>
    %c16_i32_56 = arith.constant 16 : i32
    %164 = tpu.dynamic_rotate %159 by %c16_i32_56 dim 1 : vector<4x256xf32>, i32 -> vector<4x256xf32>
    %165 = vector.broadcast %56 : vector<1x256xf32> to vector<4x256xf32>
    %166 = arith.mulf %164, %165 : vector<4x256xf32>
    %c15_i32_57 = arith.constant 15 : i32
    %167 = tpu.dynamic_rotate %159 by %c15_i32_57 dim 1 : vector<4x256xf32>, i32 -> vector<4x256xf32>
    %168 = vector.broadcast %66 : vector<1x256xf32> to vector<4x256xf32>
    %169 = arith.mulf %167, %168 : vector<4x256xf32>
    %c1_i32_58 = arith.constant 1 : i32
    %170 = tpu.dynamic_rotate %159 by %c1_i32_58 dim 1 : vector<4x256xf32>, i32 -> vector<4x256xf32>
    %171 = vector.broadcast %73 : vector<1x256xf32> to vector<4x256xf32>
    %172 = arith.mulf %170, %171 : vector<4x256xf32>
    %c255_i32_59 = arith.constant 255 : i32
    %173 = tpu.dynamic_rotate %159 by %c255_i32_59 dim 1 : vector<4x256xf32>, i32 -> vector<4x256xf32>
    %174 = vector.broadcast %80 : vector<1x256xf32> to vector<4x256xf32>
    %175 = arith.mulf %173, %174 : vector<4x256xf32>
    %c241_i32_60 = arith.constant 241 : i32
    %176 = tpu.dynamic_rotate %159 by %c241_i32_60 dim 1 : vector<4x256xf32>, i32 -> vector<4x256xf32>
    %177 = vector.broadcast %90 : vector<1x256xf32> to vector<4x256xf32>
    %178 = arith.mulf %176, %177 : vector<4x256xf32>
    %c240_i32_61 = arith.constant 240 : i32
    %179 = tpu.dynamic_rotate %159 by %c240_i32_61 dim 1 : vector<4x256xf32>, i32 -> vector<4x256xf32>
    %180 = vector.broadcast %97 : vector<1x256xf32> to vector<4x256xf32>
    %181 = arith.mulf %179, %180 : vector<4x256xf32>
    %c239_i32_62 = arith.constant 239 : i32
    %182 = tpu.dynamic_rotate %159 by %c239_i32_62 dim 1 : vector<4x256xf32>, i32 -> vector<4x256xf32>
    %183 = vector.broadcast %107 : vector<1x256xf32> to vector<4x256xf32>
    %184 = arith.mulf %182, %183 : vector<4x256xf32>
    %185 = tpu.concatenate %163, %166, %169, %172, %159, %175, %178, %181, %184 in 0 : vector<4x256xf32>, vector<4x256xf32>, vector<4x256xf32>, vector<4x256xf32>, vector<4x256xf32>, vector<4x256xf32>, vector<4x256xf32>, vector<4x256xf32>, vector<4x256xf32> -> vector<36x256xf32>
    %cst_63 = arith.constant dense<0.000000e+00> : vector<4x256xf32>
    %186 = tpu.matmul %8, %185, %cst_63 {dimension_numbers = #tpu.dot_dimension_numbers<[1], [0], [0], [1], [0, 0, 1, 1], [], []>} : vector<4x36xf32>, vector<36x256xf32>, vector<4x256xf32> -> vector<4x256xf32>
    %187 = vector.broadcast %160 : vector<4x1xf32> to vector<4x256xf32>
    %188 = arith.addf %186, %187 : vector<4x256xf32>
    %cst_64 = arith.constant 5.000000e-01 : f32
    %189 = vector.broadcast %cst_64 : f32 to vector<4x256xf32>
    %190 = arith.mulf %189, %188 : vector<4x256xf32>
    %cst_65 = arith.constant 1.41421354 : f32
    %191 = vector.broadcast %cst_65 : f32 to vector<4x256xf32>
    %192 = arith.divf %188, %191 : vector<4x256xf32>
    %193 = math.erf %192 : vector<4x256xf32>
    %cst_66 = arith.constant 1.000000e+00 : f32
    %194 = vector.broadcast %cst_66 : f32 to vector<4x256xf32>
    %195 = arith.addf %194, %193 : vector<4x256xf32>
    %196 = arith.mulf %190, %195 : vector<4x256xf32>
    %197 = tpu.concatenate %39, %158, %196 in 0 : vector<4x256xf32>, vector<4x256xf32>, vector<4x256xf32> -> vector<12x256xf32>
    %cst_67 = arith.constant dense<0.000000e+00> : vector<256xf32>
    %198 = vector.multi_reduction <add>, %197, %cst_67 [0] : vector<12x256xf32> to vector<256xf32>
    %199 = vector.shape_cast %198 : vector<256xf32> to vector<1x256xf32>
    %cst_68 = arith.constant 1.200000e+01 : f32
    %200 = vector.broadcast %cst_68 : f32 to vector<1x256xf32>
    %201 = arith.divf %199, %200 : vector<1x256xf32>
    %202 = vector.broadcast %201 : vector<1x256xf32> to vector<12x256xf32>
    %203 = arith.subf %197, %202 : vector<12x256xf32>
    %204 = arith.mulf %203, %203 : vector<12x256xf32>
    %cst_69 = arith.constant dense<0.000000e+00> : vector<256xf32>
    %205 = vector.multi_reduction <add>, %204, %cst_69 [0] : vector<12x256xf32> to vector<256xf32>
    %206 = vector.shape_cast %205 : vector<256xf32> to vector<1x256xf32>
    %cst_70 = arith.constant 1.200000e+01 : f32
    %207 = vector.broadcast %cst_70 : f32 to vector<1x256xf32>
    %208 = arith.divf %206, %207 : vector<1x256xf32>
    %209 = vector.broadcast %201 : vector<1x256xf32> to vector<12x256xf32>
    %210 = arith.subf %197, %209 : vector<12x256xf32>
    %cst_71 = arith.constant 9.99999997E-7 : f32
    %211 = vector.broadcast %cst_71 : f32 to vector<1x256xf32>
    %212 = arith.addf %208, %211 : vector<1x256xf32>
    %213 = math.rsqrt %212 : vector<1x256xf32>
    %214 = vector.broadcast %213 : vector<1x256xf32> to vector<12x256xf32>
    %215 = arith.mulf %210, %214 : vector<12x256xf32>
    %216 = vector.extract_strided_slice %0 {offsets = [0, 4], sizes = [12, 1], strides = [1, 1]} : vector<12x25xf32> to vector<12x1xf32>
    %217 = vector.broadcast %216 : vector<12x1xf32> to vector<12x256xf32>
    %218 = arith.mulf %217, %215 : vector<12x256xf32>
    %219 = vector.extract_strided_slice %0 {offsets = [0, 5], sizes = [12, 1], strides = [1, 1]} : vector<12x25xf32> to vector<12x1xf32>
    %220 = vector.broadcast %219 : vector<12x1xf32> to vector<12x256xf32>
    %221 = arith.addf %218, %220 : vector<12x256xf32>
    %cst_72 = arith.constant dense<0.000000e+00> : vector<12x256xf32>
    %222 = tpu.matmul %10, %221, %cst_72 {dimension_numbers = #tpu.dot_dimension_numbers<[1], [0], [0], [1], [0, 0, 1, 1], [], []>} : vector<12x12xf32>, vector<12x256xf32>, vector<12x256xf32> -> vector<12x256xf32>
    %223 = vector.extract_strided_slice %0 {offsets = [0, 6], sizes = [12, 1], strides = [1, 1]} : vector<12x25xf32> to vector<12x1xf32>
    %224 = vector.broadcast %223 : vector<12x1xf32> to vector<12x256xf32>
    %225 = arith.addf %222, %224 : vector<12x256xf32>
    %cst_73 = arith.constant dense<0.000000e+00> : vector<12x256xf32>
    %226 = tpu.matmul %12, %221, %cst_73 {dimension_numbers = #tpu.dot_dimension_numbers<[1], [0], [0], [1], [0, 0, 1, 1], [], []>} : vector<12x12xf32>, vector<12x256xf32>, vector<12x256xf32> -> vector<12x256xf32>
    %227 = vector.extract_strided_slice %0 {offsets = [0, 7], sizes = [12, 1], strides = [1, 1]} : vector<12x25xf32> to vector<12x1xf32>
    %228 = vector.broadcast %227 : vector<12x1xf32> to vector<12x256xf32>
    %229 = arith.addf %226, %228 : vector<12x256xf32>
    %230 = vector.extract_strided_slice %2 {offsets = [0, 0], sizes = [12, 1], strides = [1, 1]} : vector<12x9xf32> to vector<12x1xf32>
    %c17_i32_74 = arith.constant 17 : i32
    %231 = tpu.dynamic_rotate %229 by %c17_i32_74 dim 1 : vector<12x256xf32>, i32 -> vector<12x256xf32>
    %232 = vector.broadcast %49 : vector<1x256xf32> to vector<12x256xf32>
    %233 = arith.mulf %231, %232 : vector<12x256xf32>
    %234 = vector.broadcast %230 : vector<12x1xf32> to vector<12x256xf32>
    %235 = arith.mulf %234, %233 : vector<12x256xf32>
    %236 = vector.extract_strided_slice %2 {offsets = [0, 1], sizes = [12, 1], strides = [1, 1]} : vector<12x9xf32> to vector<12x1xf32>
    %c16_i32_75 = arith.constant 16 : i32
    %237 = tpu.dynamic_rotate %229 by %c16_i32_75 dim 1 : vector<12x256xf32>, i32 -> vector<12x256xf32>
    %238 = vector.broadcast %56 : vector<1x256xf32> to vector<12x256xf32>
    %239 = arith.mulf %237, %238 : vector<12x256xf32>
    %240 = vector.broadcast %236 : vector<12x1xf32> to vector<12x256xf32>
    %241 = arith.mulf %240, %239 : vector<12x256xf32>
    %242 = arith.addf %235, %241 : vector<12x256xf32>
    %243 = vector.extract_strided_slice %2 {offsets = [0, 2], sizes = [12, 1], strides = [1, 1]} : vector<12x9xf32> to vector<12x1xf32>
    %c15_i32_76 = arith.constant 15 : i32
    %244 = tpu.dynamic_rotate %229 by %c15_i32_76 dim 1 : vector<12x256xf32>, i32 -> vector<12x256xf32>
    %245 = vector.broadcast %66 : vector<1x256xf32> to vector<12x256xf32>
    %246 = arith.mulf %244, %245 : vector<12x256xf32>
    %247 = vector.broadcast %243 : vector<12x1xf32> to vector<12x256xf32>
    %248 = arith.mulf %247, %246 : vector<12x256xf32>
    %249 = arith.addf %242, %248 : vector<12x256xf32>
    %250 = vector.extract_strided_slice %2 {offsets = [0, 3], sizes = [12, 1], strides = [1, 1]} : vector<12x9xf32> to vector<12x1xf32>
    %c1_i32_77 = arith.constant 1 : i32
    %251 = tpu.dynamic_rotate %229 by %c1_i32_77 dim 1 : vector<12x256xf32>, i32 -> vector<12x256xf32>
    %252 = vector.broadcast %73 : vector<1x256xf32> to vector<12x256xf32>
    %253 = arith.mulf %251, %252 : vector<12x256xf32>
    %254 = vector.broadcast %250 : vector<12x1xf32> to vector<12x256xf32>
    %255 = arith.mulf %254, %253 : vector<12x256xf32>
    %256 = arith.addf %249, %255 : vector<12x256xf32>
    %257 = vector.extract_strided_slice %2 {offsets = [0, 4], sizes = [12, 1], strides = [1, 1]} : vector<12x9xf32> to vector<12x1xf32>
    %258 = vector.broadcast %257 : vector<12x1xf32> to vector<12x256xf32>
    %259 = arith.mulf %258, %229 : vector<12x256xf32>
    %260 = arith.addf %256, %259 : vector<12x256xf32>
    %261 = vector.extract_strided_slice %2 {offsets = [0, 5], sizes = [12, 1], strides = [1, 1]} : vector<12x9xf32> to vector<12x1xf32>
    %c255_i32_78 = arith.constant 255 : i32
    %262 = tpu.dynamic_rotate %229 by %c255_i32_78 dim 1 : vector<12x256xf32>, i32 -> vector<12x256xf32>
    %263 = vector.broadcast %80 : vector<1x256xf32> to vector<12x256xf32>
    %264 = arith.mulf %262, %263 : vector<12x256xf32>
    %265 = vector.broadcast %261 : vector<12x1xf32> to vector<12x256xf32>
    %266 = arith.mulf %265, %264 : vector<12x256xf32>
    %267 = arith.addf %260, %266 : vector<12x256xf32>
    %268 = vector.extract_strided_slice %2 {offsets = [0, 6], sizes = [12, 1], strides = [1, 1]} : vector<12x9xf32> to vector<12x1xf32>
    %c241_i32_79 = arith.constant 241 : i32
    %269 = tpu.dynamic_rotate %229 by %c241_i32_79 dim 1 : vector<12x256xf32>, i32 -> vector<12x256xf32>
    %270 = vector.broadcast %90 : vector<1x256xf32> to vector<12x256xf32>
    %271 = arith.mulf %269, %270 : vector<12x256xf32>
    %272 = vector.broadcast %268 : vector<12x1xf32> to vector<12x256xf32>
    %273 = arith.mulf %272, %271 : vector<12x256xf32>
    %274 = arith.addf %267, %273 : vector<12x256xf32>
    %275 = vector.extract_strided_slice %2 {offsets = [0, 7], sizes = [12, 1], strides = [1, 1]} : vector<12x9xf32> to vector<12x1xf32>
    %c240_i32_80 = arith.constant 240 : i32
    %276 = tpu.dynamic_rotate %229 by %c240_i32_80 dim 1 : vector<12x256xf32>, i32 -> vector<12x256xf32>
    %277 = vector.broadcast %97 : vector<1x256xf32> to vector<12x256xf32>
    %278 = arith.mulf %276, %277 : vector<12x256xf32>
    %279 = vector.broadcast %275 : vector<12x1xf32> to vector<12x256xf32>
    %280 = arith.mulf %279, %278 : vector<12x256xf32>
    %281 = arith.addf %274, %280 : vector<12x256xf32>
    %282 = vector.extract_strided_slice %2 {offsets = [0, 8], sizes = [12, 1], strides = [1, 1]} : vector<12x9xf32> to vector<12x1xf32>
    %c239_i32_81 = arith.constant 239 : i32
    %283 = tpu.dynamic_rotate %229 by %c239_i32_81 dim 1 : vector<12x256xf32>, i32 -> vector<12x256xf32>
    %284 = vector.broadcast %107 : vector<1x256xf32> to vector<12x256xf32>
    %285 = arith.mulf %283, %284 : vector<12x256xf32>
    %286 = vector.broadcast %282 : vector<12x1xf32> to vector<12x256xf32>
    %287 = arith.mulf %286, %285 : vector<12x256xf32>
    %288 = arith.addf %281, %287 : vector<12x256xf32>
    %289 = vector.extract_strided_slice %0 {offsets = [0, 8], sizes = [12, 1], strides = [1, 1]} : vector<12x25xf32> to vector<12x1xf32>
    %290 = vector.broadcast %289 : vector<12x1xf32> to vector<12x256xf32>
    %291 = arith.addf %288, %290 : vector<12x256xf32>
    %292 = arith.mulf %291, %225 : vector<12x256xf32>
    %cst_82 = arith.constant dense<0.000000e+00> : vector<12x256xf32>
    %293 = tpu.matmul %14, %292, %cst_82 {dimension_numbers = #tpu.dot_dimension_numbers<[1], [0], [0], [1], [0, 0, 1, 1], [], []>} : vector<12x12xf32>, vector<12x256xf32>, vector<12x256xf32> -> vector<12x256xf32>
    %cst_83 = arith.constant dense<0.000000e+00> : vector<12xf32>
    %294 = vector.multi_reduction <add>, %293, %cst_83 [1] : vector<12x256xf32> to vector<12xf32>
    %295 = vector.shape_cast %294 : vector<12xf32> to vector<12x1xf32>
    %cst_84 = arith.constant 2.560000e+02 : f32
    %296 = vector.broadcast %cst_84 : f32 to vector<12x1xf32>
    %297 = arith.divf %295, %296 : vector<12x1xf32>
    %298 = vector.extract_strided_slice %0 {offsets = [0, 9], sizes = [12, 1], strides = [1, 1]} : vector<12x25xf32> to vector<12x1xf32>
    %299 = arith.addf %297, %298 : vector<12x1xf32>
    %300 = vector.broadcast %299 : vector<12x1xf32> to vector<12x256xf32>
    %301 = arith.mulf %292, %300 : vector<12x256xf32>
    %cst_85 = arith.constant dense<0.000000e+00> : vector<12x256xf32>
    %302 = tpu.matmul %16, %301, %cst_85 {dimension_numbers = #tpu.dot_dimension_numbers<[1], [0], [0], [1], [0, 0, 1, 1], [], []>} : vector<12x12xf32>, vector<12x256xf32>, vector<12x256xf32> -> vector<12x256xf32>
    %303 = vector.extract_strided_slice %0 {offsets = [0, 10], sizes = [12, 1], strides = [1, 1]} : vector<12x25xf32> to vector<12x1xf32>
    %304 = vector.broadcast %303 : vector<12x1xf32> to vector<12x256xf32>
    %305 = arith.addf %302, %304 : vector<12x256xf32>
    %306 = vector.extract_strided_slice %0 {offsets = [0, 11], sizes = [12, 1], strides = [1, 1]} : vector<12x25xf32> to vector<12x1xf32>
    %307 = vector.broadcast %306 : vector<12x1xf32> to vector<12x256xf32>
    %308 = arith.mulf %305, %307 : vector<12x256xf32>
    %309 = arith.addf %197, %308 : vector<12x256xf32>
    %c0_86 = arith.constant 0 : index
    %c0_87 = arith.constant 0 : index
    %c0_88 = arith.constant 0 : index
    %310 = vector.load %arg5[%c0_86, %c0_87, %c0_88] : memref<1x12x256xf32, #tpu.memory_space<vmem>>, vector<1x12x256xf32>
    %311 = vector.shape_cast %310 : vector<1x12x256xf32> to vector<12x256xf32>
    %312 = vector.shape_cast %309 : vector<12x256xf32> to vector<1x12x256xf32>
    tpu.vector_store %arg5[%c0_86, %c0_87, %c0_88], %312 {strides = array<i32>} : memref<1x12x256xf32, #tpu.memory_space<vmem>>, vector<1x12x256xf32>,
    return
  }
  func.func @transform_0(%arg0: i32) -> (i32, i32, i32) {
    %c0_i32 = arith.constant 0 : i32
    %c0_i32_0 = arith.constant 0 : i32
    %c0_i32_1 = arith.constant 0 : i32
    return %arg0, %c0_i32, %c0_i32_0 : i32, i32, i32
  }
  func.func @transform_1(%arg0: i32) -> (i32, i32, i32) {
    %c0_i32 = arith.constant 0 : i32
    %c0_i32_0 = arith.constant 0 : i32
    %c0_i32_1 = arith.constant 0 : i32
    %c0_i32_2 = arith.constant 0 : i32
    return %c0_i32, %c0_i32_0, %c0_i32_1 : i32, i32, i32
  }
  func.func @transform_2(%arg0: i32) -> (i32, i32, i32) {
    %c0_i32 = arith.constant 0 : i32
    %c0_i32_0 = arith.constant 0 : i32
    %c0_i32_1 = arith.constant 0 : i32
    %c0_i32_2 = arith.constant 0 : i32
    return %c0_i32, %c0_i32_0, %c0_i32_1 : i32, i32, i32
  }
  func.func @transform_3(%arg0: i32) -> (i32, i32) {
    %c0_i32 = arith.constant 0 : i32
    %c0_i32_0 = arith.constant 0 : i32
    %c0_i32_1 = arith.constant 0 : i32
    return %c0_i32, %c0_i32_0 : i32, i32
  }
  func.func @transform_4(%arg0: i32) -> (i32, i32, i32) {
    %c0_i32 = arith.constant 0 : i32
    %c0_i32_0 = arith.constant 0 : i32
    %c0_i32_1 = arith.constant 0 : i32
    return %arg0, %c0_i32, %c0_i32_0 : i32, i32, i32
  }
}

</mosaic_0001>

<bundles_post_ra>
// kernel: mieb_forward.1
= control target key start
LH: loop header
LB: loop body
LE: loop exit
PB: predicated region body
PF: predicated region fallthrough
CT: control target
= control target key end

     0   :  { %s2087_s15 = smov 0   ;;  %s2972_s0 = inlined_call_operand.vmem [shape: f32[2,12,256], index: 0, kind: input, shape index: {}]   ;;  %s2973_s1 = inlined_call_operand.vmem [shape: f32[3,4,36], index: 1, kind: input, shape index: {}]   ;;  %s2974_s2 = inlined_call_operand.vmem [shape: f32[4,12,12], index: 2, kind: input, shape index: {}]   ;;  %s2975_s3 = inlined_call_operand.vmem [shape: f32[12,25], index: 3, kind: input, shape index: {}]   ;;  %s2976_s4 = inlined_call_operand.vmem [shape: f32[2,12,256], index: 4, kind: output, shape index: {}]  }
   0x1 LB: > { %s1811_s16 = sadd.s32 4294967295, %s2028_s15   ;;  %p1815_p0 = scmp.ge.s32.totalorder %s2028_s15, 1  ;;  %s2028_s15 = sphi %s2087_s15, %s14_s15  }
   0x2   : > { %p162_p1 = scmp.lt.s32.totalorder %s2028_s15, 3 }
   0x4   : > { %p163_p2 = pnand %p1815_p0, %p162_p1 }
   0x6   : > { %166 = sbr.rel (%p163_p2) target bundleno = 2012 (0x7dc), region = 36 }
   0xd   : > { %p188_p3 = scmp.lt.s32.totalorder %s1811_s16, 1  ;;  %v2977_v0 = vmov 0.0   ;;  %vm244_vm0 = vcmask 1043456   ;;  %s2031_s21 = smov 1   ;;  %v2038_v5 = vmov 1   ;;  %v2150_v6 = vld [vmem:[%s2975_s3] sm:$0xff]  ;;  %v216_v9 = vlaneseq }
   0xe   : > { %567 = vmatprep.mubr.f32.mxu1 %v2977_v0  ;;  %315 = vmatprep.mubr.f32.mxu0 %v2977_v0  ;;  %s2032_s22 = smov 16   ;;  %s2033_s23 = smov 17  }
   0xf   : > { %s3039_s16 = smov (!%p188_p3, %s1811_s16), 1  ;;  %s2034_s24 = smov 15   ;;  %1966 = vset.pattern.permute.xlu0 %v2038_v5  ;;  %v2185_v10 = vand.u32 127, %v216_v9 }
  0x10   : > { %s1874_s17 = sshll.u32 %s3039_s16, 5  ;;  %s2035_s25 = smov 127  }
  0x11   : > { %s2105_s20 = scalar_lea.vmem %s2972_s0, %s1874_s17  ;;  %s2036_s26 = smov 112   ;;  %v218_v11 = vadd.s32 128, %v2185_v10  ;;  %v219_v12 = vcvt.s32.f32 %v2185_v10  ;;  %vm390_vm3 = vcmp.lt.s32.totalorder %v2185_v10, 1  ;;  %vm360_vm6 = vcmp.lt.s32.totalorder %v2185_v10, 16 }
  0x12   : > { %v230_v1 = vld [vmem:[%s2105_s20] sm:$0xff]  ;;  %v231_v2 = vld [vmem:[%s2105_s20 + $0x8] sm:$0xff]  ;;  %s2037_s27 = smov 113   ;;  %s2039_s28 = smov 111   ;;  %v2153_v7 = vld [vmem:[%s2105_s20 + $0x18] sm:$0xf] }
  0x13   : > { %v2109_v3 = vrot.slane %v230_v1, 4  ;;  %1828 = vmatprep.subr.msk.mxu0 %vm244_vm0, %v231_v2  ;;  %v2117_v4 = vrot.slane %v231_v2, 4  ;;  %v2159_v8 = vld [vmem:[%s2105_s20 + $0x10] sm:$0xf]  ;;  %v220_v13 = vcvt.s32.f32 %v218_v11  ;;  %v222_v14 = vmul.f32 0.0625, %v219_v12  ;;  %s2040_s7 = smov 116   ;;  %s197_s13 = scalar_lea.vmem %s2976_s4, %s1874_s17 }
  0x14   : > { %1829 = vmatpush1.msk.msra.mxu0 %vm244_vm0, %v230_v1  ;;  %vm341_vm9 = vcmp.lt.s32.totalorder %v2185_v10, 17  ;;  %vm373_vm14 = vcmp.lt.s32.totalorder %v2185_v10, 15  ;;  %vm403_vm15 = vcmp.lt.s32.totalorder %v2185_v10, 127 }
  0x15   : > { %386 = vrot.lane.b32.xlu1 %v2109_v3, %s2031_s21  ;;  %356 = vrot.lane.b32.xlu0 %v2109_v3, %s2032_s22  ;;  %v223_v15 = vmul.f32 0.0625, %v220_v13  ;;  %v2189_v16 = vfloor.f32 %v222_v14 }
  0x17   : > { %v2191_v17 = vfloor.f32 %v223_v15  ;;  %v226_v18 = vmul.f32 16.0, %v2189_v16  ;;  %vm344_vm4 = vcmp.ge.f32.partialorder %v2189_v16, 1.0 }
  0x18   : > { %v2233_v30 = vsel %vm344_vm4, 1.0, %v2977_v0 }
  0x19   : > { %388 = vrot.lane.b32.xlu1 %v2117_v4, %s2031_s21  ;;  %358 = vrot.lane.b32.xlu0 %v2117_v4, %s2032_s22  ;;  %v227_v19 = vmul.f32 16.0, %v2191_v17  ;;  %v2195_v20 = vsub.f32 %v219_v12, %v226_v18  ;;  %vm345_vm5 = vcmp.ge.f32.partialorder %v2191_v17, 1.0 }
  0x1a   : > { %v2238_v31 = vsel %vm345_vm5, 1.0, %v2977_v0 }
  0x1b   : > { %v2197_v21 = vsub.f32 %v220_v13, %v227_v19  ;;  %vm346_vm1 = vcmp.ge.f32.partialorder %v2195_v20, 1.0  ;;  %vm376_vm8 = vcmp.le.f32.partialorder %v2195_v20, 14.0 }
  0x1c   : > { %vm348_vm7 = vmand %vm344_vm4, %vm346_vm1  ;;  %v2219_v26 = vsel %vm346_vm1, 1.0, %v2977_v0  ;;  %v2285_v58 = vsel %vm376_vm8, 1.0, %v2977_v0 }
  0x1d   : > { %339 = vrot.lane.b32.xlu1 %v2117_v4, %s2033_s23  ;;  %337 = vrot.lane.b32.xlu0 %v2109_v3, %s2033_s23  ;;  %vm347_vm2 = vcmp.ge.f32.partialorder %v2197_v21, 1.0  ;;  %vm377_vm11 = vcmp.le.f32.partialorder %v2197_v21, 14.0  ;;  %vm378_vm12 = vmand %vm344_vm4, %vm376_vm8  ;;  %v2249_v35 = vsel %vm348_vm7, 1.0, %v2977_v0  ;;  %vm419_vm4 = vcmp.le.f32.partialorder %v2189_v16, 14.0 }
  0x1e   : > { %vm349_vm10 = vmand %vm345_vm5, %vm347_vm2  ;;  %v2224_v27 = vsel %vm347_vm2, 1.0, %v2977_v0  ;;  %v2268_v44 = vsel %vm378_vm12, 1.0, %v2977_v0  ;;  %v2290_v59 = vsel %vm377_vm11, 1.0, %v2977_v0  ;;  %vm433_vm7 = vcmp.lt.s32.totalorder %v2185_v10, 112 }
  0x1f   : > { %v2252_v36 = vsel %vm349_vm10, 1.0, %v2977_v0  ;;  %vm379_vm13 = vmand %vm345_vm5, %vm377_vm11  ;;  %vm420_vm5 = vcmp.le.f32.partialorder %v2191_v17, 14.0  ;;  %v2306_v13 = vsel %vm419_vm4, 1.0, %v2977_v0 }
  0x20   : > { %v2271_v45 = vsel %vm379_vm13, 1.0, %v2977_v0  ;;  %v2311_v14 = vsel %vm420_vm5, 1.0, %v2977_v0  ;;  %vm421_vm10 = vmand %vm419_vm4, %vm346_vm1  ;;  %vm416_vm1 = vcmp.lt.s32.totalorder %v2185_v10, 113 }
  0x21   : > { %371 = vrot.lane.b32.xlu1 %v2117_v4, %s2034_s24  ;;  %369 = vrot.lane.b32.xlu0 %v2109_v3, %s2034_s24  ;;  %vm422_vm12 = vmand %vm420_vm5, %vm347_vm2 }
  0x22   : > { %vm449_vm2 = vmand %vm419_vm4, %vm376_vm8  ;;  %vm493_vm8 = vcmask 293888   ;;  %vm2057_vm4 = vmmov 1  }
  0x23   : > { %vm450_vm13 = vmand %vm420_vm5, %vm377_vm11  ;;  %vm241_vm11 = vcmask 31744  }
  0x24   : > { %v2355_v17 = vsel %vm450_vm13, 1.0, %v2977_v0  ;;  %vm2611_vm5 = vmpackc.low %vm244_vm0, %vm2057_vm4 }
  0x25   : > { %401 = vrot.lane.b32.xlu1 %v2117_v4, %s2035_s25  ;;  %399 = vrot.lane.b32.xlu0 %v2109_v3, %s2035_s25  ;;  %2997 = vst [vmem:[#allocation2_spill] sm:$0xff] %v2355_v17 }
  0x29   : > { %431 = vrot.lane.b32.xlu1 %v2117_v4, %s2036_s26  ;;  %429 = vrot.lane.b32.xlu0 %v2109_v3, %s2036_s26 }
  0x2d   : > { %414 = vrot.lane.b32.xlu1 %v2117_v4, %s2037_s27  ;;  %412 = vrot.lane.b32.xlu0 %v2109_v3, %s2037_s27 }
  0x31   : > { %444 = vrot.lane.b32.xlu1 %v2117_v4, %s2039_s28  ;;  %442 = vrot.lane.b32.xlu0 %v2109_v3, %s2039_s28 }
  0x35   : > { %490 = vperm.xlu0 %1966, %v2150_v6   ;;  %784 = vrot.lane.b32.xlu1 %v2153_v7, %s2032_s22 }
  0x39   : > { %782 = vrot.lane.b32.xlu0 %v2159_v8, %s2032_s22  ;;  %800 = vrot.lane.b32.xlu1 %v2153_v7, %s2031_s21 }
  0x3d   : > { %798 = vrot.lane.b32.xlu0 %v2159_v8, %s2031_s21  ;;  %776 = vrot.lane.b32.xlu1 %v2153_v7, %s2033_s23 }
  0x41   : > { %774 = vrot.lane.b32.xlu0 %v2159_v8, %s2033_s23  ;;  %792 = vrot.lane.b32.xlu1 %v2153_v7, %s2034_s24 }
  0x45   : > { %790 = vrot.lane.b32.xlu0 %v2159_v8, %s2034_s24  ;;  %808 = vrot.lane.b32.xlu1 %v2153_v7, %s2035_s25 }
  0x49   : > { %806 = vrot.lane.b32.xlu0 %v2159_v8, %s2035_s25  ;;  %824 = vrot.lane.b32.xlu1 %v2153_v7, %s2036_s26 }
  0x4d   : > { %822 = vrot.lane.b32.xlu0 %v2159_v8, %s2036_s26 }
  0x51   : > { %814 = vrot.lane.b32.xlu0 %v2159_v8, %s2037_s27 }
  0x87   : > { %v387_v22 = vpop.permute.xlu1 %386  ;;  %v357_v23 = vpop.permute.xlu0 %356 }
  0x8b   : > { %v389_v24 = vpop.permute.xlu1 %388  ;;  %v359_v25 = vpop.permute.xlu0 %358 }
  0x8c   : > { %v391_v28 = vsel %vm390_vm3, %v387_v22, %v389_v24  ;;  %v392_v29 = vsel %vm390_vm3, %v389_v24, %v387_v22  ;;  %v361_v32 = vsel %vm360_vm6, %v357_v23, %v359_v25  ;;  %v362_v33 = vsel %vm360_vm6, %v359_v25, %v357_v23 }
  0x8d   : > { %v397_v38 = vmul.f32 %v2219_v26, %v392_v29  ;;  %v398_v39 = vmul.f32 %v2224_v27, %v391_v28  ;;  %v367_v42 = vmul.f32 %v2233_v30, %v362_v33  ;;  %v368_v43 = vmul.f32 %v2238_v31, %v361_v32 }
  0x8e   : > { %v2331_v29 = vsel %vm421_vm10, 1.0, %v2977_v0  ;;  %v2334_v32 = vsel %vm422_vm12, 1.0, %v2977_v0  ;;  %vm446_vm10 = vcmp.lt.s32.totalorder %v2185_v10, 111  ;;  %vm1058_vm12 = vcmask 97280  }
  0x8f   : > { %v340_v34 = vpop.permute.xlu1 %339  ;;  %v338_v37 = vpop.permute.xlu0 %337  ;;  %v465_v50 = vrot.slane %v397_v38, 4  ;;  %v466_v51 = vrot.slane %v398_v39, 4  ;;  %v459_v54 = vrot.slane %v367_v42, 4  ;;  %v460_v55 = vrot.slane %v368_v43, 4 }
  0x90   : > { %v342_v40 = vsel %vm341_vm9, %v338_v37, %v340_v34  ;;  %v343_v41 = vsel %vm341_vm9, %v340_v34, %v338_v37  ;;  %v2352_v43 = vsel %vm449_vm2, 1.0, %v2977_v0 }
  0x91   : > { %v354_v46 = vmul.f32 %v2249_v35, %v343_v41  ;;  %v355_v47 = vmul.f32 %v2252_v36, %v342_v40 }
  0x93   : > { %v372_v48 = vpop.permute.xlu1 %371  ;;  %v370_v49 = vpop.permute.xlu0 %369  ;;  %v482_v62 = vsel %vm244_vm0, %v355_v47, %v460_v55  ;;  %v481_v1 = vsel %vm244_vm0, %v354_v46, %v459_v54 }
  0x94   : > { %v374_v52 = vsel %vm373_vm14, %v370_v49, %v372_v48  ;;  %v375_v53 = vsel %vm373_vm14, %v372_v48, %v370_v49 }
  0x95   : > { %v384_v56 = vmul.f32 %v2268_v44, %v375_v53  ;;  %v385_v57 = vmul.f32 %v2271_v45, %v374_v52 }
  0x97   : > { %v402_v60 = vpop.permute.xlu1 %401  ;;  %v400_v61 = vpop.permute.xlu0 %399  ;;  %v484_v63 = vsel %vm244_vm0, %v385_v57, %v466_v51  ;;  %v483_v2 = vsel %vm244_vm0, %v384_v56, %v465_v50 }
  0x98   : > { %v404_v5 = vsel %vm403_vm15, %v400_v61, %v402_v60  ;;  %v405_v9 = vsel %vm403_vm15, %v402_v60, %v400_v61  ;;  %v1876_v11 = vpack.c.bf16 %v484_v63, %v482_v62  ;;  %v1878_v12 = vpack.c.bf16 %v483_v2, %v481_v1 }
  0x99   : > { %v410_v15 = vmul.f32 %v2285_v58, %v404_v5  ;;  %v411_v18 = vmul.f32 %v2290_v59, %v405_v9 }
  0x9a   : > { %1877 = vmatprep.subr.bf16.mxu1 %v1876_v11 }
  0x9b   : > { %v432_v19 = vpop.permute.xlu1 %431  ;;  %1879 = vmatpush1.bf16.msra.mxu1 %v1878_v12  ;;  %v430_v22 = vpop.permute.xlu0 %429  ;;  %v471_v33 = vrot.slane %v410_v15, 4  ;;  %v472_v34 = vrot.slane %v411_v18, 4 }
  0x9c   : > { %v434_v23 = vsel %vm433_vm7, %v430_v22, %v432_v19  ;;  %v435_v24 = vsel %vm433_vm7, %v432_v19, %v430_v22 }
  0x9d   : > { %v440_v25 = vmul.f32 %v2306_v13, %v434_v23  ;;  %v441_v28 = vmul.f32 %v2311_v14, %v435_v24  ;;  %v486_v46 = vsel %vm244_vm0, %v2117_v4, %v472_v34  ;;  %v485_v49 = vsel %vm244_vm0, %v2109_v3, %v471_v33  ;;  %v200_v3 = vld [vmem:[%s2973_s1] sm:$0xf] }
  0x9f   : > { %v415_v37 = vpop.permute.xlu1 %414  ;;  %v413_v38 = vpop.permute.xlu0 %412  ;;  %v477_v20 = vrot.slane %v440_v25, 4  ;;  %v478_v16 = vrot.slane %v441_v28, 4 }
  0xa0   : > { %v417_v39 = vsel %vm416_vm1, %v413_v38, %v415_v37  ;;  %v418_v40 = vsel %vm416_vm1, %v415_v37, %v413_v38 }
  0xa1   : > { %v427_v41 = vmul.f32 %v2331_v29, %v417_v39  ;;  %v428_v42 = vmul.f32 %v2334_v32, %v418_v40 }
  0xa3   : > { %v445_v21 = vpop.permute.xlu1 %444  ;;  %v488_v47 = vsel %vm244_vm0, %v428_v42, %v478_v16  ;;  %v443_v48 = vpop.permute.xlu0 %442  ;;  %v487_v50 = vsel %vm244_vm0, %v427_v41, %v477_v20 }
  0xa4   : > { %v1880_v51 = vpack.c.bf16 %v488_v47, %v486_v46  ;;  %v447_v52 = vsel %vm446_vm10, %v443_v48, %v445_v21  ;;  %v448_v53 = vsel %vm446_vm10, %v445_v21, %v443_v48  ;;  %v1882_v54 = vpack.c.bf16 %v487_v50, %v485_v49 }
  0xa5   : > { %v456_v55 = vmul.f32 %v2355_v17, %v448_v53  ;;  %v455_v4 = vmul.f32 %v2352_v43, %v447_v52 }
  0xa6   : > { %1881 = vmatprep.subr.bf16.mxu1 %v1880_v51 }
  0xa7   : > { %1883 = vmatpush1.bf16.msra.mxu1 %v1882_v54  ;;  %v785_v57 = vpop.permute.xlu1 %784 }
  0xa8   : > { %1847 = vmatprep.subr.msk.mxu1 %vm244_vm0, %v456_v55 }
  0xab   : > { %1848 = vmatpush1.msk.msra.mxu1 %vm244_vm0, %v455_v4  ;;  %v801_v63 = vpop.permute.xlu1 %800 }
  0xac   : > { %1849 = vmatmul.mubr.msk.f32.vlgmr.msra.gmra.mrb[0].mxu1 %vm493_vm8, %v200_v3 }
  0xad   : > { %947 = vmatprep.mubr.f32.mxu1 %v2977_v0 }
  0xaf   : > { %v777_v18 = vpop.permute.xlu1 %776 }
  0xb3   : > { %v793_v38 = vpop.permute.xlu1 %792 }
  0xb4   : > { %v491_v56 = vpop.permute.xlu0 %490 }
  0xb8   : > { %v783_v60 = vpop.permute.xlu0 %782 }
  0xb9   : > { %v786_v61 = vsel %vm360_vm6, %v783_v60, %v785_v57  ;;  %v787_v62 = vsel %vm360_vm6, %v785_v57, %v783_v60 }
  0xba   : > { %v788_v9 = vmul.f32 %v2233_v30, %v787_v62  ;;  %v789_v11 = vmul.f32 %v2238_v31, %v786_v61 }
  0xbc   : > { %v799_v1 = vpop.permute.xlu0 %798  ;;  %v840_v24 = vrot.slane %v788_v9, 4  ;;  %v841_v25 = vrot.slane %v789_v11, 4  ;;  %v2043_v9 = vmov 4   ;;  %v2044_v11 = vmov 3  }
  0xbd   : > { %v802_v2 = vsel %vm390_vm3, %v799_v1, %v801_v63  ;;  %v803_v5 = vsel %vm390_vm3, %v801_v63, %v799_v1 }
  0xbe   : > { %v804_v12 = vmul.f32 %v2219_v26, %v803_v5  ;;  %v805_v15 = vmul.f32 %v2224_v27, %v802_v2  ;;  %v2042_v2 = vmov 2   ;;  %v2449_v5 = vld [vmem:[%s2975_s3 + $0x8] sm:$0xf] }
  0xbf   : > { %1967 = vset.pattern.permute.xlu1 %v2042_v2 }
  0xc0   : > { %v775_v19 = vpop.permute.xlu0 %774  ;;  %v846_v34 = vrot.slane %v804_v12, 4  ;;  %v847_v37 = vrot.slane %v805_v15, 4  ;;  %v2045_v12 = vmov 5  }
  0xc1   : > { %v778_v22 = vsel %vm341_vm9, %v775_v19, %v777_v18  ;;  %v779_v23 = vsel %vm341_vm9, %v777_v18, %v775_v19  ;;  %v809_v18 = vpop.permute.xlu1 %808 }
  0xc2   : > { %v780_v28 = vmul.f32 %v2249_v35, %v779_v23  ;;  %v781_v33 = vmul.f32 %v2252_v36, %v778_v22 }
  0xc4   : > { %v791_v39 = vpop.permute.xlu0 %790  ;;  %v862_v16 = vsel %vm244_vm0, %v780_v28, %v840_v24  ;;  %v863_v21 = vsel %vm244_vm0, %v781_v33, %v841_v25 }
  0xc5   : > { %v794_v40 = vsel %vm373_vm14, %v791_v39, %v793_v38  ;;  %v795_v20 = vsel %vm373_vm14, %v793_v38, %v791_v39  ;;  %v825_v22 = vpop.permute.xlu1 %824 }
  0xc6   : > { %v796_v41 = vmul.f32 %v2268_v44, %v795_v20  ;;  %v797_v42 = vmul.f32 %v2271_v45, %v794_v40 }
  0xc8   : > { %v864_v46 = vsel %vm244_vm0, %v796_v41, %v846_v34  ;;  %v865_v47 = vsel %vm244_vm0, %v797_v42, %v847_v37  ;;  %v807_v15 = vpop.permute.xlu0 %806 }
  0xc9   : > { %v1892_v48 = vpack.c.bf16 %v865_v47, %v863_v21  ;;  %v1894_v49 = vpack.c.bf16 %v864_v46, %v862_v16 }
  0xcb   : > { %1893 = vmatprep.subr.bf16.mxu1 %v1892_v48 }
  0xcc   : > { %1895 = vmatpush1.bf16.msra.mxu1 %v1894_v49  ;;  %v823_v19 = vpop.permute.xlu0 %822 }
  0xd0   : > { %v2459_v23 = vpop.permute.xlu0 %814 }
 0x17f   : > { %v569_v50 = vpop.f32.mrb[0].mxu1 }
 0x180   : > { %v570_v51 = vadd.f32 %v569_v50, %v491_v56  ;;  %v571_v52 = vpop.f32.mrb[1].mxu1 }
 0x181   : > { %v572_v53 = vadd.f32 %v571_v52, %v491_v56  ;;  %v2041_v56 = vmov 0  }
 0x182   : > { %v576_v54 = vmul.f32 0.70710677, %v570_v51  ;;  %v574_v57 = vmul.f32 0.5, %v570_v51  ;;  %1968 = vset.pattern.permute.xlu0 %v2041_v56 }
 0x183   : > { %v577_v55 = vmul.f32 0.70710677, %v572_v53  ;;  %v575_v63 = vmul.f32 0.5, %v572_v53 }
 0x184   : > { %2000 = verf.f32 %v576_v54 }
 0x185   : > { %2002 = verf.f32 %v577_v55 }
 0x18e   : > { %v2001_v4 = vpop.eup %2000 }
 0x18f   : > { %v2003_v3 = vpop.eup %2002  ;;  %v580_v60 = vadd.f32 1.0, %v2001_v4 }
 0x190   : > { %v581_v62 = vadd.f32 1.0, %v2003_v3 }
 0x191   : > { %v2404_v61 = vmul.f32 %v580_v60, %v574_v57 }
 0x192   : > { %v2410_v1 = vmul.f32 %v581_v62, %v575_v63 }
 0x193   : > { %608 = vrot.lane.b32.xlu0 %v2404_v61, %s2031_s21  ;;  %592 = vrot.lane.b32.xlu1 %v2404_v61, %s2032_s22 }
 0x197   : > { %584 = vrot.lane.b32.xlu0 %v2404_v61, %s2033_s23  ;;  %594 = vrot.lane.b32.xlu1 %v2410_v1, %s2032_s22 }
 0x19b   : > { %600 = vrot.lane.b32.xlu0 %v2404_v61, %s2034_s24  ;;  %610 = vrot.lane.b32.xlu1 %v2410_v1, %s2031_s21 }
 0x19f   : > { %616 = vrot.lane.b32.xlu0 %v2404_v61, %s2035_s25  ;;  %586 = vrot.lane.b32.xlu1 %v2410_v1, %s2033_s23 }
 0x1a3   : > { %632 = vrot.lane.b32.xlu0 %v2404_v61, %s2036_s26  ;;  %602 = vrot.lane.b32.xlu1 %v2410_v1, %s2034_s24 }
 0x1a7   : > { %624 = vrot.lane.b32.xlu0 %v2404_v61, %s2037_s27  ;;  %618 = vrot.lane.b32.xlu1 %v2410_v1, %s2035_s25 }
 0x1ab   : > { %239 = vrot.lane.b32.xlu0 %v2150_v6, %s2040_s7  ;;  %634 = vrot.lane.b32.xlu1 %v2410_v1, %s2036_s26 }
 0x1af   : > { %642 = vrot.lane.b32.xlu0 %v2410_v1, %s2039_s28  ;;  %626 = vrot.lane.b32.xlu1 %v2410_v1, %s2037_s27 }
 0x1b3   : > { %816 = vrot.lane.b32.xlu1 %v2153_v7, %s2037_s27  ;;  %832 = vrot.lane.b32.xlu0 %v2153_v7, %s2039_s28 }
 0x1b7   : > { %640 = vrot.lane.b32.xlu1 %v2404_v61, %s2039_s28  ;;  %236 = vperm.xlu0 %1968, %v2150_v6  }
 0x1bb   : > { %830 = vrot.lane.b32.xlu1 %v2159_v8, %s2039_s28  ;;  %1971 = vset.pattern.permute.xlu0 %v2043_v9 }
 0x1bc   : > { %1031 = vperm.xlu0 %1971, %v2449_v5  }
 0x1bf   : > { %681 = vperm.xlu1 %1967, %v2150_v6  }
 0x1c3   : > { %1969 = vset.pattern.permute.xlu1 %v2044_v11 }
 0x1c4   : > { %871 = vperm.xlu1 %1969, %v2150_v6  }
 0x1c8   : > { %1970 = vset.pattern.permute.xlu1 %v2043_v9 }
 0x1c9   : > { %1026 = vperm.xlu1 %1970, %v2150_v6  }
 0x1cd   : > { %1972 = vset.pattern.permute.xlu1 %v2045_v12 }
 0x1ce   : > { %1039 = vperm.xlu1 %1972, %v2150_v6  }
 0x1d2   : > { %1043 = vperm.xlu1 %1972, %v2449_v5  }
 0x205   : > { %v593_v24 = vpop.permute.xlu1 %592  ;;  %v609_v25 = vpop.permute.xlu0 %608 }
 0x209   : > { %v595_v28 = vpop.permute.xlu1 %594  ;;  %v585_v33 = vpop.permute.xlu0 %584 }
 0x20a   : > { %v596_v38 = vsel %vm360_vm6, %v593_v24, %v595_v28  ;;  %v597_v41 = vsel %vm360_vm6, %v595_v28, %v593_v24 }
 0x20b   : > { %v599_v21 = vmul.f32 %v2238_v31, %v596_v38  ;;  %v598_v48 = vmul.f32 %v2233_v30, %v597_v41 }
 0x20d   : > { %v611_v34 = vpop.permute.xlu1 %610  ;;  %v601_v37 = vpop.permute.xlu0 %600  ;;  %v651_v55 = vrot.slane %v599_v21, 4  ;;  %v650_v63 = vrot.slane %v598_v48, 4  ;;  %v826_v21 = vsel %vm433_vm7, %v823_v19, %v825_v22 }
 0x20e   : > { %v612_v39 = vsel %vm390_vm3, %v609_v25, %v611_v34  ;;  %v613_v40 = vsel %vm390_vm3, %v611_v34, %v609_v25 }
 0x20f   : > { %v615_v46 = vmul.f32 %v2224_v27, %v612_v39  ;;  %v614_v47 = vmul.f32 %v2219_v26, %v613_v40 }
 0x211   : > { %v587_v20 = vpop.permute.xlu1 %586  ;;  %v617_v16 = vpop.permute.xlu0 %616  ;;  %v657_v4 = vrot.slane %v615_v46, 4  ;;  %v656_v60 = vrot.slane %v614_v47, 4 }
 0x212   : > { %v588_v42 = vsel %vm341_vm9, %v585_v33, %v587_v20  ;;  %v589_v49 = vsel %vm341_vm9, %v587_v20, %v585_v33  ;;  %v810_v33 = vsel %vm403_vm15, %v807_v15, %v809_v18 }
 0x213   : > { %v591_v50 = vmul.f32 %v2252_v36, %v588_v42  ;;  %v590_v62 = vmul.f32 %v2249_v35, %v589_v49  ;;  %v812_v47 = vmul.f32 %v2285_v58, %v810_v33 }
 0x215   : > { %v603_v51 = vpop.permute.xlu1 %602  ;;  %v633_v52 = vpop.permute.xlu0 %632  ;;  %v673_v9 = vsel %vm244_vm0, %v591_v50, %v651_v55  ;;  %v672_v34 = vsel %vm244_vm0, %v590_v62, %v650_v63 }
 0x216   : > { %v604_v53 = vsel %vm373_vm14, %v601_v37, %v603_v51  ;;  %v605_v54 = vsel %vm373_vm14, %v603_v51, %v601_v37  ;;  %v811_v37 = vsel %vm403_vm15, %v809_v18, %v807_v15  ;;  %v827_v15 = vsel %vm433_vm7, %v825_v22, %v823_v19 }
 0x217   : > { %v606_v3 = vmul.f32 %v2268_v44, %v605_v54  ;;  %v607_v57 = vmul.f32 %v2271_v45, %v604_v53  ;;  %v813_v48 = vmul.f32 %v2290_v59, %v811_v37  ;;  %v829_v53 = vmul.f32 %v2311_v14, %v827_v15 }
 0x219   : > { %v619_v56 = vpop.permute.xlu1 %618  ;;  %v625_v2 = vpop.permute.xlu0 %624  ;;  %v675_v11 = vsel %vm244_vm0, %v607_v57, %v657_v4  ;;  %v674_v28 = vsel %vm244_vm0, %v606_v3, %v656_v60  ;;  %v852_v57 = vrot.slane %v812_v47, 4  ;;  %v853_v60 = vrot.slane %v813_v48, 4 }
 0x21a   : > { %v620_v12 = vsel %vm403_vm15, %v617_v16, %v619_v56  ;;  %v621_v24 = vsel %vm403_vm15, %v619_v56, %v617_v16  ;;  %v1884_v25 = vpack.c.bf16 %v675_v11, %v673_v9  ;;  %v1886_v16 = vpack.c.bf16 %v674_v28, %v672_v34 }
 0x21b   : > { %v622_v38 = vmul.f32 %v2285_v58, %v620_v12  ;;  %v623_v39 = vmul.f32 %v2290_v59, %v621_v24 }
 0x21c   : > { %1885 = vmatprep.subr.bf16.mxu0 %v1884_v25 }
 0x21d   : > { %v635_v40 = vpop.permute.xlu1 %634  ;;  %v240_v20 = vpop.permute.xlu0 %239  ;;  %v662_v49 = vrot.slane %v622_v38, 4  ;;  %v663_v50 = vrot.slane %v623_v39, 4  ;;  %v867_v39 = vsel %vm244_vm0, %v2153_v7, %v853_v60  ;;  %v1820_v7 = vld [vmem:[%s2973_s1 + $0x4] sm:$0xf] }
 0x21e   : > { %v636_v41 = vsel %vm433_vm7, %v633_v52, %v635_v40  ;;  %v637_v42 = vsel %vm433_vm7, %v635_v40, %v633_v52  ;;  %1830 = vmatmul.mubr.msk.f32.vlgmr.msra.gmra.mrb[0].mxu0 %vm241_vm11, %v240_v20  ;;  %v828_v52 = vmul.f32 %v2306_v13, %v826_v21 }
 0x21f   : > { %v638_v18 = vmul.f32 %v2306_v13, %v636_v41  ;;  %v639_v46 = vmul.f32 %v2311_v14, %v637_v42  ;;  %1887 = vmatpush1.bf16.msra.mxu0 %v1886_v16  ;;  %757 = vmatprep.mubr.f32.mxu0 %v2977_v0  ;;  %v676_v62 = vsel %vm244_vm0, %v2404_v61, %v662_v49  ;;  %v859_v61 = vrot.slane %v829_v53, 4 }
 0x220   : > { %v677_v9 = vsel %vm244_vm0, %v2410_v1, %v663_v50  ;;  %v858_v28 = vrot.slane %v828_v52, 4  ;;  %v1821_v50 = vld [vmem:[%s2973_s1 + $0x8] sm:$0xf]  ;;  %v2047_v52 = vmov 16   ;;  %v2048_v53 = vmov 18  }
 0x221   : > { %v627_v51 = vpop.permute.xlu1 %626  ;;  %v668_v54 = vrot.slane %v638_v18, 4  ;;  %v669_v55 = vrot.slane %v639_v46, 4  ;;  %v643_v33 = vpop.permute.xlu0 %642 }
 0x222   : > { %v628_v19 = vsel %vm416_vm1, %v625_v2, %v627_v51  ;;  %v629_v22 = vsel %vm416_vm1, %v627_v51, %v625_v2  ;;  %v2046_v51 = vmov 7  }
 0x223   : > { %v630_v4 = vmul.f32 %v2331_v29, %v628_v19  ;;  %v631_v3 = vmul.f32 %v2334_v32, %v629_v22  ;;  %1973 = vset.pattern.permute.xlu0 %v2046_v51  ;;  %1974 = vset.pattern.permute.xlu1 %v2046_v51  ;;  %v2049_v19 = vmov 17  }
 0x224   : > { %1149 = vperm.xlu0 %1973, %v2150_v6   ;;  %1153 = vperm.xlu1 %1974, %v2449_v5  }
 0x225   : > { %v678_v63 = vsel %vm244_vm0, %v630_v4, %v668_v54  ;;  %v817_v56 = vpop.permute.xlu1 %816  ;;  %v679_v11 = vsel %vm244_vm0, %v631_v3, %v669_v55  ;;  %v833_v18 = vpop.permute.xlu0 %832  ;;  %v2050_v55 = vmov 19   ;;  %v2051_v4 = vmov 20  }
 0x226   : > { %v818_v2 = vsel %vm416_vm1, %v2459_v23, %v817_v56  ;;  %v819_v12 = vsel %vm416_vm1, %v817_v56, %v2459_v23  ;;  %v1888_v24 = vpack.c.bf16 %v679_v11, %v677_v9  ;;  %v1890_v25 = vpack.c.bf16 %v678_v63, %v676_v62 }
 0x227   : > { %v820_v34 = vmul.f32 %v2331_v29, %v818_v2  ;;  %v821_v37 = vmul.f32 %v2334_v32, %v819_v12  ;;  %v866_v23 = vsel %vm244_vm0, %v2159_v8, %v852_v57  ;;  %v2052_v57 = vmov 21  }
 0x228   : > { %1889 = vmatprep.subr.bf16.mxu0 %v1888_v24  ;;  %1976 = vset.pattern.permute.xlu0 %v2047_v52  ;;  %v2053_v9 = vmov 23  }
 0x229   : > { %v868_v1 = vsel %vm244_vm0, %v820_v34, %v858_v28  ;;  %v641_v38 = vpop.permute.xlu1 %640  ;;  %1891 = vmatpush1.bf16.msra.mxu0 %v1890_v25  ;;  %v869_v40 = vsel %vm244_vm0, %v821_v37, %v859_v61  ;;  %1975 = vset.pattern.permute.xlu1 %v2047_v52  ;;  %v2054_v37 = vmov 24  }
 0x22a   : > { %v644_v20 = vsel %vm446_vm10, %v641_v38, %v643_v33  ;;  %v645_v16 = vsel %vm446_vm10, %v643_v33, %v641_v38  ;;  %v1896_v41 = vpack.c.bf16 %v869_v40, %v867_v39  ;;  %v1898_v42 = vpack.c.bf16 %v868_v1, %v866_v23  ;;  %1260 = vperm.xlu0 %1976, %v2449_v5  }
 0x22b   : > { %v646_v21 = vmul.f32 %v2352_v43, %v644_v20  ;;  %v647_v15 = vmul.f32 %v2355_v17, %v645_v16  ;;  %1256 = vperm.xlu1 %1975, %v2150_v6   ;;  %v2055_v20 = vmov 22   ;;  %v2056_v16 = vmov 6  }
 0x22c   : > { %1897 = vmatprep.subr.bf16.mxu1 %v1896_v41 }
 0x22d   : > { %v831_v46 = vpop.permute.xlu1 %830  ;;  %1899 = vmatpush1.bf16.msra.mxu1 %v1898_v42  ;;  %1850 = vmatprep.subr.msk.mxu0 %vm244_vm0, %v647_v15 }
 0x22e   : > { %v834_v8 = vsel %vm446_vm10, %v831_v46, %v833_v18  ;;  %v835_v47 = vsel %vm446_vm10, %v833_v18, %v831_v46  ;;  %1851 = vmatpush1.msk.msra.mxu0 %vm244_vm0, %v646_v21  ;;  %1978 = vset.pattern.permute.xlu0 %v2048_v53 }
 0x22f   : > { %v836_v48 = vmul.f32 %v2352_v43, %v834_v8  ;;  %v837_v49 = vmul.f32 %v2355_v17, %v835_v47  ;;  %1852 = vmatmul.mubr.msk.f32.vlgmr.msra.gmra.mrb[2].mxu0 %vm493_vm8, %v1820_v7  ;;  %1977 = vset.pattern.permute.xlu1 %v2049_v19 }
 0x230   : > { %1135 = vmatprep.mubr.f32.mxu0 %v2977_v0  ;;  %1316 = vperm.xlu0 %1978, %v2150_v6  }
 0x231   : > { %1853 = vmatprep.subr.msk.mxu1 %vm244_vm0, %v837_v49  ;;  %1284 = vperm.xlu1 %1977, %v2150_v6  }
 0x232   : > { %1854 = vmatpush1.msk.msra.mxu1 %vm244_vm0, %v836_v48 }
 0x233   : > { %1855 = vmatmul.mubr.msk.f32.vlgmr.msra.gmra.mrb[2].mxu1 %vm493_vm8, %v1821_v50 }
 0x234   : > { %1141 = vmatprep.mubr.f32.mxu1 %v2977_v0  ;;  %1981 = vset.pattern.permute.xlu0 %v2050_v55 }
 0x235   : > { %1288 = vperm.xlu1 %1977, %v2449_v5   ;;  %1352 = vperm.xlu0 %1981, %v2449_v5  }
 0x236   : > { %v237_v3 = vpop.permute.xlu0 %236 }
 0x239   : > { %1979 = vset.pattern.permute.xlu1 %v2048_v53  ;;  %1982 = vset.pattern.permute.xlu0 %v2051_v4 }
 0x23a   : > { %1320 = vperm.xlu1 %1979, %v2449_v5   ;;  %1364 = vperm.xlu0 %1982, %v2150_v6  }
 0x23e   : > { %1980 = vset.pattern.permute.xlu1 %v2050_v55  ;;  %1985 = vset.pattern.permute.xlu0 %v2052_v57  ;;  %v682_v63 = vpop.permute.xlu1 %681 }
 0x23f   : > { %1348 = vperm.xlu1 %1980, %v2150_v6   ;;  %1400 = vperm.xlu0 %1985, %v2449_v5  }
 0x243   : > { %1983 = vset.pattern.permute.xlu1 %v2051_v4  ;;  %1987 = vset.pattern.permute.xlu0 %v2053_v9  ;;  %v872_v28 = vpop.permute.xlu1 %871 }
 0x244   : > { %1368 = vperm.xlu1 %1983, %v2449_v5   ;;  %1460 = vperm.xlu0 %1987, %v2150_v6  }
 0x248   : > { %1984 = vset.pattern.permute.xlu1 %v2052_v57  ;;  %1990 = vset.pattern.permute.xlu0 %v2054_v37 }
 0x249   : > { %1396 = vperm.xlu1 %1984, %v2150_v6   ;;  %1496 = vperm.xlu0 %1990, %v2449_v5  }
 0x24d   : > { %1986 = vset.pattern.permute.xlu1 %v2055_v20  ;;  %1991 = vset.pattern.permute.xlu0 %v2056_v16 }
 0x24e   : > { %1428 = vperm.xlu1 %1986, %v2150_v6   ;;  %1051 = vperm.xlu0 %1991, %v2150_v6  }
 0x252   : > { %1432 = vperm.xlu1 %1986, %v2449_v5  }
 0x256   : > { %1988 = vset.pattern.permute.xlu1 %v2053_v9 }
 0x257   : > { %1464 = vperm.xlu1 %1988, %v2449_v5  }
 0x25b   : > { %1989 = vset.pattern.permute.xlu1 %v2054_v37 }
 0x25c   : > { %1492 = vperm.xlu1 %1989, %v2150_v6  }
 0x260   : > { %1992 = vset.pattern.permute.xlu1 %v2056_v16 }
 0x261   : > { %1055 = vperm.xlu1 %1992, %v2449_v5  }
 0x2f1   : > { %v317_v22 = vpop.f32.mrb[0].mxu0 }
 0x2f2   : > { %v319_v54 = vpop.f32.mrb[1].mxu0  ;;  %v318_v60 = vadd.f32 %v317_v22, %v237_v3 }
 0x2f3   : > { %v320_v62 = vadd.f32 %v319_v54, %v237_v3 }
 0x2f4   : > { %v325_v56 = vmul.f32 0.70710677, %v318_v60  ;;  %v322_v49 = vmul.f32 0.5, %v318_v60 }
 0x2f5   : > { %v326_v11 = vmul.f32 0.70710677, %v320_v62  ;;  %v323_v52 = vmul.f32 0.5, %v320_v62 }
 0x2f6   : > { %2004 = verf.f32 %v325_v56 }
 0x2f7   : > { %2006 = verf.f32 %v326_v11 }
 0x300   : > { %v2005_v41 = vpop.eup %2004 }
 0x301   : > { %v2007_v42 = vpop.eup %2006  ;;  %v329_v18 = vadd.f32 1.0, %v2005_v41 }
 0x302   : > { %v759_v2 = vpop.f32.mrb[2].mxu0  ;;  %v330_v8 = vadd.f32 1.0, %v2007_v42 }
 0x303   : > { %v760_v12 = vadd.f32 %v759_v2, %v682_v63  ;;  %v761_v24 = vpop.f32.mrb[3].mxu0  ;;  %v331_v22 = vmul.f32 %v329_v18, %v322_v49 }
 0x304   : > { %v762_v25 = vadd.f32 %v761_v24, %v682_v63  ;;  %v332_v3 = vmul.f32 %v330_v8, %v323_v52 }
 0x305   : > { %v766_v61 = vmul.f32 0.70710677, %v760_v12  ;;  %v764_v7 = vmul.f32 0.5, %v760_v12 }
 0x306   : > { %v767_v33 = vmul.f32 0.70710677, %v762_v25  ;;  %v949_v34 = vpop.f32.mrb[2].mxu1  ;;  %v765_v47 = vmul.f32 0.5, %v762_v25 }
 0x307   : > { %2008 = verf.f32 %v766_v61  ;;  %v950_v1 = vadd.f32 %v949_v34, %v872_v28  ;;  %v951_v38 = vpop.f32.mrb[3].mxu1 }
 0x308   : > { %2010 = verf.f32 %v767_v33  ;;  %v952_v39 = vadd.f32 %v951_v38, %v872_v28 }
 0x309   : > { %v956_v40 = vmul.f32 0.70710677, %v950_v1  ;;  %v954_v55 = vmul.f32 0.5, %v950_v1 }
 0x30a   : > { %v957_v23 = vmul.f32 0.70710677, %v952_v39  ;;  %v955_v63 = vmul.f32 0.5, %v952_v39 }
 0x30b   : > { %2012 = verf.f32 %v956_v40 }
 0x30c   : > { %2014 = verf.f32 %v957_v23 }
 0x311   : > { %v2009_v21 = vpop.eup %2008 }
 0x312   : > { %v2011_v15 = vpop.eup %2010  ;;  %v770_v46 = vadd.f32 1.0, %v2009_v21 }
 0x313   : > { %v771_v48 = vadd.f32 1.0, %v2011_v15 }
 0x314   : > { %v772_v50 = vmul.f32 %v770_v46, %v764_v7 }
 0x315   : > { %v2013_v51 = vpop.eup %2012  ;;  %v773_v53 = vmul.f32 %v771_v48, %v765_v47 }
 0x316   : > { %v2015_v19 = vpop.eup %2014  ;;  %v966_v54 = vrot.slane %v772_v50, 4  ;;  %v960_v4 = vadd.f32 1.0, %v2013_v51 }
 0x317   : > { %v967_v57 = vrot.slane %v773_v53, 4  ;;  %v961_v56 = vadd.f32 1.0, %v2015_v19 }
 0x318   : > { %v2586_v11 = vmul.f32 %v960_v4, %v954_v55  ;;  %v2589_v9 = vsel %vm244_vm0, %v331_v22, %v966_v54 }
 0x319   : > { %2999 = vst [vmem:[#allocation4_spill] sm:$0xff] %v2589_v9  ;;  %v2591_v60 = vmul.f32 %v961_v56, %v955_v63  ;;  %v2594_v62 = vsel %vm244_vm0, %v332_v3, %v967_v57 }
 0x31a   : > { %2998 = vst [vmem:[#allocation3_spill] sm:$0xff] %v2586_v11  ;;  %3001 = vst [vmem:[#allocation6_spill] sm:$0xff] %v2594_v62  ;;  %v972_v2 = vsel %vm244_vm0, %v2586_v11, 0.0 }
 0x31b   : > { %3000 = vst [vmem:[#allocation5_spill] sm:$0xff] %v2591_v60  ;;  %v980_v12 = vsel %vm244_vm0, %v2591_v60, 0.0  ;;  %v973_v24 = vadd.f32 %v972_v2, %v2589_v9 }
 0x31c   : > { %v981_v25 = vadd.f32 %v980_v12, %v2594_v62 }
 0x31d   : > { %v974_v28 = vrot.slane %v973_v24, 4 }
 0x31e   : > { %v982_v61 = vrot.slane %v981_v25, 4 }
 0x31f   : > { %v975_v33 = vadd.f32 %v974_v28, %v973_v24 }
 0x320   : > { %v983_v34 = vadd.f32 %v982_v61, %v981_v25  ;;  %v1027_v61 = vpop.permute.xlu1 %1026 }
 0x321   : > { %v976_v37 = vrot.slane %v975_v33, 2 }
 0x322   : > { %v984_v1 = vrot.slane %v983_v34, 2 }
 0x323   : > { %v977_v6 = vadd.f32 %v976_v37, %v975_v33  ;;  %v1032_v37 = vpop.permute.xlu0 %1031 }
 0x324   : > { %v985_v38 = vadd.f32 %v984_v1, %v983_v34  ;;  %v1040_v33 = vpop.permute.xlu1 %1039 }
 0x325   : > { %v978_v39 = vrot.slane %v977_v6, 1 }
 0x326   : > { %v986_v40 = vrot.slane %v985_v38, 1 }
 0x327   : > { %v979_v23 = vadd.f32 %v978_v39, %v977_v6 }
 0x328   : > { %v987_v20 = vadd.f32 %v986_v40, %v985_v38 }
 0x329   : > { %v989_v41 = vmul.f32 0.083333336, %v979_v23 }
 0x32a   : > { %v990_v42 = vmul.f32 0.083333336, %v987_v20 }
 0x32b   : > { %v991_v21 = vsub.f32 %v2589_v9, %v989_v41  ;;  %v993_v15 = vsub.f32 %v2586_v11, %v989_v41 }
 0x32c   : > { %v992_v16 = vsub.f32 %v2594_v62, %v990_v42  ;;  %v994_v18 = vsub.f32 %v2591_v60, %v990_v42  ;;  %v1044_v42 = vpop.permute.xlu1 %1043 }
 0x32d   : > { %v995_v7 = vmul.f32 %v991_v21, %v991_v21  ;;  %v997_v46 = vmul.f32 %v993_v15, %v993_v15 }
 0x32e   : > { %v996_v8 = vmul.f32 %v992_v16, %v992_v16  ;;  %v998_v47 = vmul.f32 %v994_v18, %v994_v18 }
 0x32f   : > { %v999_v48 = vsel %vm244_vm0, %v997_v46, 0.0 }
 0x330   : > { %v1000_v49 = vadd.f32 %v999_v48, %v995_v7  ;;  %v1007_v50 = vsel %vm244_vm0, %v998_v47, 0.0 }
 0x331   : > { %v1008_v51 = vadd.f32 %v1007_v50, %v996_v8 }
 0x332   : > { %v1001_v52 = vrot.slane %v1000_v49, 4 }
 0x333   : > { %v1009_v53 = vrot.slane %v1008_v51, 4 }
 0x334   : > { %v1002_v19 = vadd.f32 %v1001_v52, %v1000_v49  ;;  %v3002_v49 = vmov 0  ;;  %v2058_v52 = vmov 8  }
 0x335   : > { %v1010_v22 = vadd.f32 %v1009_v53, %v1008_v51  ;;  %v3003_v49 = vsel %vm2611_vm5, 4294967295, %v3002_v49  ;;  %v1823_v51 = vld [vmem:[%s2974_s2 + $0x18] sm:$0xf]  ;;  %1994 = vset.pattern.permute.xlu0 %v2058_v52  ;;  %1993 = vset.pattern.permute.xlu1 %v2058_v52  ;;  %v1150_v53 = vpop.permute.xlu0 %1149 }
 0x336   : > { %v1003_v54 = vrot.slane %v1002_v19, 2  ;;  %3004 = vst [vmem:[#allocation7_spill] sm:$0xff] %v3003_v49 }
 0x337   : > { %v1011_v55 = vrot.slane %v1010_v22, 2 }
 0x338   : > { %v1004_v4 = vadd.f32 %v1003_v54, %v1002_v19 }
 0x339   : > { %v1012_v3 = vadd.f32 %v1011_v55, %v1010_v22  ;;  %v2647_v19 = vpop.permute.xlu0 %1260  ;;  %v1154_v55 = vpop.permute.xlu1 %1153 }
 0x33a   : > { %v1005_v57 = vrot.slane %v1004_v4, 1 }
 0x33b   : > { %v1013_v63 = vrot.slane %v1012_v3, 1 }
 0x33c   : > { %v1006_v56 = vadd.f32 %v1005_v57, %v1004_v4 }
 0x33d   : > { %v1014_v2 = vadd.f32 %v1013_v63, %v1012_v3  ;;  %v2649_v22 = vpop.permute.xlu0 %1316  ;;  %v2655_v3 = vpop.permute.xlu1 %1256 }
 0x33e   : > { %v1015_v12 = vmul.f32 0.083333336, %v1006_v56 }
 0x33f   : > { %v1016_v24 = vmul.f32 0.083333336, %v1014_v2 }
 0x340   : > { %v1017_v25 = vadd.f32 1e-06, %v1015_v12 }
 0x341   : > { %v1018_v28 = vadd.f32 1e-06, %v1016_v24  ;;  %v2651_v54 = vpop.permute.xlu0 %1352  ;;  %v2659_v63 = vpop.permute.xlu1 %1284 }
 0x342   : > { %2016 = vrsqrt.f32 %v1017_v25 }
 0x343   : > { %2018 = vrsqrt.f32 %v1018_v28 }
 0x345   : > { %v2653_v4 = vpop.permute.xlu0 %1364  ;;  %v2663_v2 = vpop.permute.xlu1 %1288 }
 0x349   : > { %v2657_v57 = vpop.permute.xlu0 %1400  ;;  %v2667_v24 = vpop.permute.xlu1 %1320 }
 0x34c   : > { %v2017_v34 = vpop.eup %2016 }
 0x34d   : > { %v2019_v1 = vpop.eup %2018  ;;  %v1021_v6 = vmul.f32 %v2017_v34, %v991_v21  ;;  %v1023_v38 = vmul.f32 %v2017_v34, %v993_v15  ;;  %v205_v15 = vld [vmem:[%s2974_s2] sm:$0xff]  ;;  %v2661_v56 = vpop.permute.xlu0 %1460 }
 0x34e   : > { %v1022_v39 = vmul.f32 %v2019_v1, %v992_v16  ;;  %v1024_v40 = vmul.f32 %v2019_v1, %v994_v18  ;;  %v206_v16 = vld [vmem:[%s2974_s2 + $0x8] sm:$0xf]  ;;  %v1822_v18 = vld [vmem:[%s2974_s2 + $0x10] sm:$0xff]  ;;  %3005 = vst [vmem:[#allocation8_spill] sm:$0xff] %v2661_v56 }
 0x34f   : > { %v1034_v23 = vmul.f32 %v1027_v61, %v1021_v6  ;;  %v1036_v20 = vmul.f32 %v1032_v37, %v1023_v38  ;;  %v2677_v6 = vpop.permute.xlu1 %1348 }
 0x350   : > { %v1035_v41 = vmul.f32 %v1027_v61, %v1022_v39  ;;  %v1037_v7 = vmul.f32 %v1032_v37, %v1024_v40 }
 0x351   : > { %v1046_v46 = vadd.f32 %v1040_v33, %v1034_v23  ;;  %v1048_v8 = vadd.f32 %v1044_v42, %v1036_v20  ;;  %v2665_v12 = vpop.permute.xlu0 %1496 }
 0x352   : > { %v1047_v47 = vadd.f32 %v1040_v33, %v1035_v41  ;;  %v1049_v48 = vadd.f32 %v1044_v42, %v1037_v7  ;;  %3006 = vst [vmem:[#allocation9_spill] sm:$0xff] %v2665_v12 }
 0x353   : > { %v1903_v21 = vpack.c.bf16 %v1048_v8, %v1046_v46  ;;  %v1369_v20 = vpop.permute.xlu1 %1368 }
 0x354   : > { %v1900_v50 = vpack.c.bf16 %v1049_v48, %v1047_v47  ;;  %v2739_v48 = vld [vmem:[%s2975_s3] sm:$0xff] }
 0x355   : > { %v1052_v25 = vpop.permute.xlu0 %1051  ;;  %3011 = vst [vmem:[#allocation14_spill] sm:$0xff] %v2739_v48 }
 0x356   : > { %1902 = vmatprep.subr.msk.bf16.mxu0 %vm2611_vm5, %v1900_v50  ;;  %1924 = vmatprep.subr.msk.bf16.mxu1 %vm2611_vm5, %v1900_v50 }
 0x357   : > { %1905 = vmatpush1.bf16.msk.msra.mxu0 %vm2611_vm5, %v1903_v21  ;;  %1925 = vmatpush1.bf16.msk.msra.mxu1 %vm2611_vm5, %v1903_v21 }
 0x358   : > { %1908 = vmatprep.subr.msk.bf16.mxu0 %vm2611_vm5, %v1900_v50  ;;  %v2742_v50 = vpop.permute.xlu1 %1396 }
 0x35a   : > { %1858 = vmatmul.mubr.msk.f32.vlgmr.msra.gmra.mrb[4].mxu0 %vm1058_vm12, %v205_v15  ;;  %1859 = vmatmul.mubr.msk.f32.vlgmr.msra.gmra.mrb[4].mxu1 %vm1058_vm12, %v206_v16 }
 0x35b   : > { %1911 = vmatpush1.bf16.msk.msra.mxu0 %vm2611_vm5, %v1903_v21  ;;  %1226 = vmatprep.mubr.f32.mxu0 %v2977_v0 }
 0x35c   : > { %1599 = vmatprep.mubr.f32.mxu1 %v2977_v0  ;;  %v2744_v21 = vpop.permute.xlu1 %1428 }
 0x35d   : > { %3012 = vst [vmem:[#allocation15_spill] sm:$0xff] %v2744_v21 }
 0x35e   : > { %1862 = vmatmul.mubr.msk.f32.vlgmr.msra.gmra.mrb[6].mxu0 %vm1058_vm12, %v1822_v18 }
 0x35f   : > { %1232 = vmatprep.mubr.f32.mxu0 %v2977_v0 }
 0x360   : > { %v2746_v15 = vpop.permute.xlu1 %1432 }
 0x362   : > { %1863 = vmatmul.mubr.msk.f32.gmra.mrb[8].mxu0 %vm1058_vm12, %v1823_v51 }
 0x363   : > { %1723 = vmatprep.mubr.f32.mxu0 %v2977_v0 }
 0x42d   : > { %v1137_v28 = vpop.f32.mrb[4].mxu0  ;;  %v2669_v61 = vpop.f32.mrb[4].mxu1 }
 0x42e   : > { %3007 = vst [vmem:[#allocation10_spill] sm:$0xff] %v2669_v61  ;;  %v2671_v33 = vadd.f32 %v1137_v28, %v1052_v25  ;;  %v1139_v34 = vpop.f32.mrb[5].mxu0  ;;  %v2673_v37 = vpop.f32.mrb[5].mxu1 }
 0x42f   : > { %3009 = vst [vmem:[#allocation12_spill] sm:$0xff] %v2673_v37  ;;  %v2675_v1 = vadd.f32 %v1139_v34, %v1052_v25 }
 0x430   : > { %3008 = vst [vmem:[#allocation11_spill] sm:$0xff] %v2671_v33 }
 0x431   : > { %3010 = vst [vmem:[#allocation13_spill] sm:$0xff] %v2675_v1  ;;  %v1228_v38 = vpop.f32.mrb[6].mxu0 }
 0x432   : > { %v2679_v39 = vadd.f32 %v1228_v38, %v1150_v53  ;;  %v1230_v40 = vpop.f32.mrb[7].mxu0 }
 0x433   : > { %v2685_v41 = vadd.f32 %v1230_v40, %v1150_v53 }
 0x434   : > { %1379 = vrot.lane.b32.xlu0 %v2679_v39, %s2035_s25  ;;  %1239 = vrot.lane.b32.xlu1 %v2679_v39, %s2033_s23 }
 0x435   : > { %v1234_v23 = vpop.f32.mrb[8].mxu0  ;;  %v3026_v10 = vld [vmem:[#allocation10_spill] sm:$0xff] }
 0x436   : > { %v1235_v42 = vadd.f32 %v1234_v23, %v1154_v55  ;;  %v1236_v7 = vpop.f32.mrb[9].mxu0 }
 0x437   : > { %v1237_v46 = vadd.f32 %v1236_v7, %v1154_v55 }
 0x438   : > { %1303 = vrot.lane.b32.xlu0 %v2685_v41, %s2034_s24  ;;  %1267 = vrot.lane.b32.xlu1 %v2679_v39, %s2032_s22  ;;  %v2691_v8 = vmul.f32 %v1369_v20, %v1235_v42 }
 0x439   : > { %v2693_v47 = vmul.f32 %v1369_v20, %v1237_v46 }
 0x43c   : > { %1383 = vrot.lane.b32.xlu0 %v2685_v41, %s2035_s25  ;;  %1299 = vrot.lane.b32.xlu1 %v2679_v39, %s2034_s24 }
 0x440   : > { %1447 = vrot.lane.b32.xlu0 %v2685_v41, %s2036_s26  ;;  %1331 = vrot.lane.b32.xlu1 %v2679_v39, %s2031_s21 }
 0x444   : > { %1241 = vrot.lane.b32.xlu0 %v1235_v42, %s2033_s23  ;;  %1411 = vrot.lane.b32.xlu1 %v2679_v39, %s2037_s27 }
 0x448   : > { %1269 = vrot.lane.b32.xlu0 %v1235_v42, %s2032_s22  ;;  %1443 = vrot.lane.b32.xlu1 %v2679_v39, %s2036_s26 }
 0x44c   : > { %1333 = vrot.lane.b32.xlu0 %v1235_v42, %s2031_s21  ;;  %1475 = vrot.lane.b32.xlu1 %v2679_v39, %s2039_s28 }
 0x450   : > { %1413 = vrot.lane.b32.xlu0 %v1235_v42, %s2037_s27  ;;  %1243 = vrot.lane.b32.xlu1 %v2685_v41, %s2033_s23 }
 0x454   : > { %1477 = vrot.lane.b32.xlu0 %v1235_v42, %s2039_s28  ;;  %1271 = vrot.lane.b32.xlu1 %v2685_v41, %s2032_s22 }
 0x458   : > { %1245 = vrot.lane.b32.xlu0 %v1237_v46, %s2033_s23  ;;  %1335 = vrot.lane.b32.xlu1 %v2685_v41, %s2031_s21 }
 0x45c   : > { %1273 = vrot.lane.b32.xlu0 %v1237_v46, %s2032_s22  ;;  %1415 = vrot.lane.b32.xlu1 %v2685_v41, %s2037_s27 }
 0x460   : > { %1337 = vrot.lane.b32.xlu0 %v1237_v46, %s2031_s21  ;;  %1479 = vrot.lane.b32.xlu1 %v2685_v41, %s2039_s28 }
 0x464   : > { %1417 = vrot.lane.b32.xlu0 %v1237_v46, %s2037_s27  ;;  %1301 = vrot.lane.b32.xlu1 %v1235_v42, %s2034_s24 }
 0x468   : > { %1481 = vrot.lane.b32.xlu0 %v1237_v46, %s2039_s28  ;;  %1381 = vrot.lane.b32.xlu1 %v1235_v42, %s2035_s25 }
 0x46c   : > { %1445 = vrot.lane.b32.xlu1 %v1235_v42, %s2036_s26  ;;  %1512 = vperm.xlu0 %1994, %v2449_v5   ;;  %v2748_v5 = vpop.permute.xlu1 %1464 }
 0x46d   : > { %3013 = vst [vmem:[#allocation16_spill] sm:$0xff] %v2748_v5 }
 0x470   : > { %1305 = vrot.lane.b32.xlu1 %v1237_v46, %s2034_s24  ;;  %v2750_v16 = vpop.permute.xlu1 %1492 }
 0x471   : > { %3014 = vst [vmem:[#allocation17_spill] sm:$0xff] %v2750_v16 }
 0x474   : > { %1385 = vrot.lane.b32.xlu1 %v1237_v46, %s2035_s25  ;;  %v2752_v18 = vpop.permute.xlu1 %1055 }
 0x475   : > { %3015 = vst [vmem:[#allocation18_spill] sm:$0xff] %v2752_v18 }
 0x478   : > { %1449 = vrot.lane.b32.xlu1 %v1237_v46, %s2036_s26 }
 0x47c   : > { %1508 = vperm.xlu1 %1993, %v2739_v48  }
 0x4a6   : > { %v1380_v51 = vpop.permute.xlu0 %1379  ;;  %v1240_v52 = vpop.permute.xlu1 %1239 }
 0x4aa   : > { %v1304_v53 = vpop.permute.xlu0 %1303  ;;  %v1268_v55 = vpop.permute.xlu1 %1267 }
 0x4ae   : > { %v1384_v25 = vpop.permute.xlu0 %1383  ;;  %v1300_v28 = vpop.permute.xlu1 %1299 }
 0x4af   : > { %v1307_v12 = vsel %vm373_vm14, %v1300_v28, %v1304_v53 }
 0x4b2   : > { %v2754_v34 = vpop.permute.xlu0 %1447  ;;  %v1332_v38 = vpop.permute.xlu1 %1331 }
 0x4b6   : > { %v1242_v40 = vpop.permute.xlu0 %1241  ;;  %v2756_v23 = vpop.permute.xlu1 %1411 }
 0x4ba   : > { %v1270_v20 = vpop.permute.xlu0 %1269  ;;  %v2758_v42 = vpop.permute.xlu1 %1443 }
 0x4be   : > { %v1334_v7 = vpop.permute.xlu0 %1333  ;;  %v2760_v46 = vpop.permute.xlu1 %1475 }
 0x4bf   : > { %3016 = vst [vmem:[#allocation19_spill] sm:$0xff] %v2760_v46  ;;  %v1309_v46 = vsel %vm373_vm14, %v1304_v53, %v1300_v28  ;;  %v1312_v53 = vmul.f32 %v2271_v45, %v1307_v12 }
 0x4c2   : > { %v1244_v0 = vpop.permute.xlu1 %1243  ;;  %v2762_v60 = vpop.permute.xlu0 %1413 }
 0x4c3   : > { %v1247_v16 = vsel %vm341_vm9, %v1240_v52, %v1244_v0  ;;  %v1249_v37 = vsel %vm341_vm9, %v1244_v0, %v1240_v52  ;;  %v1387_v0 = vsel %vm403_vm15, %v1380_v51, %v1384_v25 }
 0x4c6   : > { %v1272_v11 = vpop.permute.xlu1 %1271  ;;  %v2764_v62 = vpop.permute.xlu0 %1477 }
 0x4c7   : > { %v1275_v1 = vsel %vm360_vm6, %v1268_v55, %v1272_v11  ;;  %v1277_v33 = vsel %vm360_vm6, %v1272_v11, %v1268_v55  ;;  %v1251_v11 = vmul.f32 %v2249_v35, %v1249_v37  ;;  %v1252_v55 = vmul.f32 %v2252_v36, %v1247_v16 }
 0x4c8   : > { %v1279_v18 = vmul.f32 %v2233_v30, %v1277_v33  ;;  %v1280_v56 = vmul.f32 %v2238_v31, %v1275_v1  ;;  %v1389_v33 = vsel %vm403_vm15, %v1384_v25, %v1380_v51  ;;  %v1391_v51 = vmul.f32 %v2285_v58, %v1387_v0 }
 0x4c9   : > { %v1263_v37 = vmul.f32 %v2655_v3, %v1251_v11  ;;  %v1264_v16 = vmul.f32 %v2655_v3, %v1252_v55 }
 0x4ca   : > { %v1336_v9 = vpop.permute.xlu1 %1335  ;;  %v1246_v49 = vpop.permute.xlu0 %1245  ;;  %v1291_v1 = vmul.f32 %v2659_v63, %v1279_v18  ;;  %v1292_v52 = vmul.f32 %v2659_v63, %v1280_v56  ;;  %v1392_v18 = vmul.f32 %v2290_v59, %v1389_v33  ;;  %v1324_v33 = vmul.f32 %v2649_v22, %v1312_v53 }
 0x4cb   : > { %v1339_v28 = vsel %vm390_vm3, %v1332_v38, %v1336_v9  ;;  %v1341_v17 = vsel %vm390_vm3, %v1336_v9, %v1332_v38  ;;  %v1248_v3 = vsel %vm341_vm9, %v1242_v40, %v1246_v49  ;;  %v1250_v11 = vsel %vm341_vm9, %v1246_v49, %v1242_v40 }
 0x4cc   : > { %v1295_v25 = vadd.f32 %v1291_v1, %v1263_v37  ;;  %v1343_v38 = vmul.f32 %v2219_v26, %v1341_v17  ;;  %v1344_v55 = vmul.f32 %v2224_v27, %v1339_v28  ;;  %v1253_v1 = vmul.f32 %v2249_v35, %v1250_v11 }
 0x4cd   : > { %v1372_v49 = vmul.f32 %v2653_v4, %v2685_v41  ;;  %v1371_v17 = vmul.f32 %v2653_v4, %v2679_v39  ;;  %v1403_v37 = vmul.f32 %v2742_v50, %v1391_v51  ;;  %v1451_v4 = vsel %vm433_vm7, %v2758_v42, %v2754_v34 }
 0x4ce   : > { %v2766_v48 = vpop.permute.xlu1 %1415  ;;  %v1274_v5 = vpop.permute.xlu0 %1273  ;;  %v1453_v39 = vsel %vm433_vm7, %v2754_v34, %v2758_v42 }
 0x4cf   : > { %v1276_v63 = vsel %vm360_vm6, %v1270_v20, %v1274_v5  ;;  %v1278_v56 = vsel %vm360_vm6, %v1274_v5, %v1270_v20  ;;  %v1421_v51 = vsel %vm416_vm1, %v2766_v48, %v2756_v23 }
 0x4d0   : > { %v1281_v5 = vmul.f32 %v2233_v30, %v1278_v56  ;;  %v1282_v20 = vmul.f32 %v2238_v31, %v1276_v63  ;;  %v1355_v30 = vmul.f32 %v2677_v6, %v1343_v38  ;;  %v1356_v31 = vmul.f32 %v2677_v6, %v1344_v55 }
 0x4d2   : > { %v2776_v61 = vpop.permute.xlu1 %1479  ;;  %v1338_v9 = vpop.permute.xlu0 %1337  ;;  %v1293_v41 = vmul.f32 %v2663_v2, %v1281_v5  ;;  %v1294_v6 = vmul.f32 %v2663_v2, %v1282_v20 }
 0x4d3   : > { %3017 = vst [vmem:[#allocation20_spill] sm:$0xff] %v2776_v61  ;;  %v1311_v61 = vmul.f32 %v2268_v44, %v1309_v46  ;;  %v1296_v46 = vadd.f32 %v1292_v52, %v1264_v16  ;;  %v1254_v52 = vmul.f32 %v2252_v36, %v1248_v3  ;;  %v1340_v35 = vsel %vm390_vm3, %v1334_v7, %v1338_v9 }
 0x4d4   : > { %v1342_v36 = vsel %vm390_vm3, %v1338_v9, %v1334_v7  ;;  %v1265_v16 = vmul.f32 %v2647_v19, %v1253_v1  ;;  %v1419_v7 = vsel %vm416_vm1, %v2756_v23, %v2766_v48  ;;  %v1346_v2 = vmul.f32 %v2224_v27, %v1340_v35 }
 0x4d5   : > { %v1323_v0 = vmul.f32 %v2649_v22, %v1311_v61  ;;  %v1404_v61 = vmul.f32 %v2742_v50, %v1392_v18  ;;  %v1328_v53 = vadd.f32 %v1324_v33, %v1296_v46  ;;  %v1266_v28 = vmul.f32 %v2647_v19, %v1254_v52 }
 0x4d6   : > { %v1302_v21 = vpop.permute.xlu1 %1301  ;;  %v1418_v50 = vpop.permute.xlu0 %1417  ;;  %v1345_v42 = vmul.f32 %v2219_v26, %v1342_v36  ;;  %v1297_v3 = vadd.f32 %v1293_v41, %v1265_v16  ;;  %v1423_v48 = vmul.f32 %v2331_v29, %v1419_v7  ;;  %v1424_v26 = vmul.f32 %v2334_v32, %v1421_v51 }
 0x4d7   : > { %v1327_v22 = vadd.f32 %v1323_v0, %v1295_v25  ;;  %v1360_v56 = vadd.f32 %v1356_v31, %v1328_v53  ;;  %v1298_v11 = vadd.f32 %v1294_v6, %v1266_v28  ;;  %v1420_v27 = vsel %vm416_vm1, %v2762_v60, %v1418_v50  ;;  %v3018_v28 = vld [vmem:[#allocation2_spill] sm:$0xff] }
 0x4d8   : > { %v1358_v38 = vmul.f32 %v2651_v54, %v1346_v2 }
 0x4d9   : > { %v1359_v63 = vadd.f32 %v1355_v30, %v1327_v22  ;;  %v1425_v22 = vmul.f32 %v2331_v29, %v1420_v27 }
 0x4da   : > { %v1382_v12 = vpop.permute.xlu1 %1381  ;;  %v1482_v55 = vpop.permute.xlu0 %1481 }
 0x4db   : > { %v1375_v52 = vadd.f32 %v1371_v17, %v1359_v63 }
 0x4dd   : > { %v1407_v6 = vadd.f32 %v1403_v37, %v1375_v52 }
 0x4de   : > { %v1446_v40 = vpop.permute.xlu1 %1445 }
 0x4e2   : > { %v1306_v34 = vpop.permute.xlu1 %1305 }
 0x4e3   : > { %v1308_v18 = vsel %vm373_vm14, %v1302_v21, %v1306_v34  ;;  %v1310_v19 = vsel %vm373_vm14, %v1306_v34, %v1302_v21  ;;  %v1422_v21 = vsel %vm416_vm1, %v1418_v50, %v2762_v60  ;;  %v1437_v50 = vmul.f32 %v2746_v15, %v1425_v22  ;;  %v3019_v34 = vld [vmem:[#allocation15_spill] sm:$0xff] }
 0x4e4   : > { %v1313_v25 = vmul.f32 %v2268_v44, %v1310_v19  ;;  %v1314_v46 = vmul.f32 %v2271_v45, %v1308_v18  ;;  %v1357_v45 = vmul.f32 %v2651_v54, %v1345_v42  ;;  %v1426_v53 = vmul.f32 %v2334_v32, %v1422_v21 }
 0x4e5   : > { %v1484_v54 = vsel %vm446_vm10, %v2764_v62, %v1482_v55  ;;  %v1435_v42 = vmul.f32 %v3019_v34, %v1423_v48  ;;  %v1436_v2 = vmul.f32 %v3019_v34, %v1424_v26  ;;  %v3024_v26 = vld [vmem:[#allocation8_spill] sm:$0xff]  ;;  %v2059_v34 = vmov 9  }
 0x4e6   : > { %v1325_v23 = vmul.f32 %v2667_v24, %v1313_v25  ;;  %v1326_v44 = vmul.f32 %v2667_v24, %v1314_v46  ;;  %v1386_v9 = vpop.permute.xlu1 %1385  ;;  %v1376_v24 = vadd.f32 %v1372_v49, %v1360_v56  ;;  %v1489_v16 = vmul.f32 %v2352_v43, %v1484_v54  ;;  %v3021_v25 = vld [vmem:[#allocation20_spill] sm:$0xff]  ;;  %v3022_v46 = vld [vmem:[#allocation19_spill] sm:$0xff]  ;;  %1995 = vset.pattern.permute.xlu1 %v2059_v34 }
 0x4e7   : > { %v1388_v0 = vsel %vm403_vm15, %v1382_v12, %v1386_v9  ;;  %v1390_v33 = vsel %vm403_vm15, %v1386_v9, %v1382_v12  ;;  %v1486_v12 = vsel %vm446_vm10, %v1482_v55, %v2764_v62  ;;  %v1439_v63 = vadd.f32 %v1435_v42, %v1407_v6  ;;  %v3025_v55 = vld [vmem:[#allocation18_spill] sm:$0xff]  ;;  %1996 = vset.pattern.permute.xlu0 %v2059_v34 }
 0x4e8   : > { %v1329_v5 = vadd.f32 %v1325_v23, %v1297_v3  ;;  %v1330_v20 = vadd.f32 %v1326_v44, %v1298_v11  ;;  %v1393_v60 = vmul.f32 %v2285_v58, %v1388_v0  ;;  %v1394_v1 = vmul.f32 %v2290_v59, %v1390_v33  ;;  %v3027_v33 = vld [vmem:[#allocation12_spill] sm:$0xff] }
 0x4e9   : > { %v1408_v41 = vadd.f32 %v1404_v61, %v1376_v24  ;;  %v1490_v7 = vmul.f32 %v3018_v28, %v1486_v12  ;;  %v3020_v61 = vld [vmem:[#allocation16_spill] sm:$0xff]  ;;  %v1483_v3 = vsel %vm446_vm10, %v3022_v46, %v3021_v25  ;;  %v1144_v0 = vadd.f32 %v3026_v10, %v3025_v55  ;;  %v3028_v24 = vld [vmem:[#allocation17_spill] sm:$0xff] }
 0x4ea   : > { %v1361_v30 = vadd.f32 %v1357_v45, %v1329_v5  ;;  %v1362_v31 = vadd.f32 %v1358_v38, %v1330_v20  ;;  %v1450_v35 = vpop.permute.xlu1 %1449  ;;  %v1405_v58 = vmul.f32 %v2657_v57, %v1393_v60  ;;  %v1406_v59 = vmul.f32 %v2657_v57, %v1394_v1 }
 0x4eb   : > { %v1452_v29 = vsel %vm433_vm7, %v1446_v40, %v1450_v35  ;;  %v1454_v32 = vsel %vm433_vm7, %v1450_v35, %v1446_v40  ;;  %v1438_v57 = vmul.f32 %v2746_v15, %v1426_v53  ;;  %v1440_v56 = vadd.f32 %v1436_v2, %v1408_v41  ;;  %v1513_v23 = vpop.permute.xlu0 %1512  ;;  %v1824_v41 = vld [vmem:[%s2974_s2 + $0x20] sm:$0xff] }
 0x4ec   : > { %v1377_v49 = vadd.f32 %v2691_v8, %v1361_v30  ;;  %v1378_v17 = vadd.f32 %v2693_v47, %v1362_v31  ;;  %v1457_v36 = vmul.f32 %v2306_v13, %v1452_v29  ;;  %v1458_v62 = vmul.f32 %v2311_v14, %v1454_v32  ;;  %v3030_v32 = vld [vmem:[#allocation13_spill] sm:$0xff] }
 0x4ed   : > { %v1455_v8 = vmul.f32 %v2306_v13, %v1451_v4  ;;  %v1456_v47 = vmul.f32 %v2311_v14, %v1453_v39  ;;  %v1485_v13 = vsel %vm446_vm10, %v3021_v25, %v3022_v46  ;;  %v3023_v14 = vld [vmem:[#allocation9_spill] sm:$0xff]  ;;  %v1487_v44 = vmul.f32 %v2352_v43, %v1483_v3 }
 0x4ee   : > { %v1409_v51 = vadd.f32 %v1405_v58, %v1377_v49  ;;  %v1410_v40 = vadd.f32 %v1406_v59, %v1378_v17  ;;  %v1469_v37 = vmul.f32 %v3020_v61, %v1457_v36  ;;  %v1470_v18 = vmul.f32 %v3020_v61, %v1458_v62  ;;  %v3029_v59 = vld [vmem:[#allocation11_spill] sm:$0xff]  ;;  %v3033_v61 = vld [vmem:[#allocation14_spill] sm:$0xff] }
 0x4ef   : > { %v1501_v4 = vmul.f32 %v3023_v14, %v1489_v16  ;;  %v1502_v39 = vmul.f32 %v3023_v14, %v1490_v7  ;;  %v1467_v27 = vmul.f32 %v3024_v26, %v1455_v8  ;;  %v1468_v21 = vmul.f32 %v3024_v26, %v1456_v47  ;;  %v1826_v26 = vld [vmem:[%s2974_s2 + $0x30] sm:$0xff] }
 0x4f0   : > { %v1441_v19 = vadd.f32 %v1437_v50, %v1409_v51  ;;  %v1442_v15 = vadd.f32 %v1438_v57, %v1410_v40  ;;  %v1488_v9 = vmul.f32 %v3018_v28, %v1485_v13  ;;  %v1146_v5 = vadd.f32 %v3027_v33, %v3025_v55  ;;  %v1825_v50 = vld [vmem:[%s2974_s2 + $0x28] sm:$0xf] }
 0x4f1   : > { %v1472_v1 = vadd.f32 %v1468_v21, %v1440_v56  ;;  %v1471_v52 = vadd.f32 %v1467_v27, %v1439_v63  ;;  %v1499_v22 = vmul.f32 %v3028_v24, %v1487_v44  ;;  %v3032_v6 = vmov 0.0   ;;  %v1827_v27 = vld [vmem:[%s2974_s2 + $0x38] sm:$0xf] }
 0x4f2   : > { %v1473_v11 = vadd.f32 %v1469_v37, %v1441_v19  ;;  %v1474_v48 = vadd.f32 %v1470_v18, %v1442_v15  ;;  %v1500_v53 = vmul.f32 %v3028_v24, %v1488_v9  ;;  %v2021_v15 = vld [vmem:[%s2975_s3 + $0x8] sm:$0xf]  ;;  %v2060_v56 = vmov 10  }
 0x4f3   : > { %v1503_v30 = vadd.f32 %v1499_v22, %v1471_v52  ;;  %v2061_v25 = vmov 11   ;;  %v3035_v52 = vld [vmem:[#allocation6_spill] sm:$0xff] }
 0x4f4   : > { %v1505_v45 = vadd.f32 %v1501_v4, %v1473_v11  ;;  %v1506_v38 = vadd.f32 %v1502_v39, %v1474_v48  ;;  %v1504_v12 = vadd.f32 %v1500_v53, %v1472_v1 }
 0x4f6   : > { %v1517_v20 = vadd.f32 %v1513_v23, %v1505_v45  ;;  %v1518_v60 = vadd.f32 %v1513_v23, %v1506_v38 }
 0x4f8   : > { %v1521_v54 = vmul.f32 %v1517_v20, %v1144_v0  ;;  %v1522_v43 = vmul.f32 %v1518_v60, %v1146_v5  ;;  %v3034_v5 = vld [vmem:[#allocation4_spill] sm:$0xff] }
 0x4fb   : > { %v1509_v31 = vpop.permute.xlu1 %1508 }
 0x4fc   : > { %v1515_v35 = vadd.f32 %v1509_v31, %v1503_v30  ;;  %v1516_v58 = vadd.f32 %v1509_v31, %v1504_v12  ;;  %v3036_v12 = vld [vmem:[#allocation3_spill] sm:$0xff]  ;;  %v3037_v31 = vld [vmem:[#allocation5_spill] sm:$0xff] }
 0x4fe   : > { %v1519_v29 = vmul.f32 %v1515_v35, %v3029_v59  ;;  %v1520_v49 = vmul.f32 %v1516_v58, %v3030_v32 }
 0x500   : > { %v1912_v17 = vpack.c.bf16 %v1522_v43, %v1520_v49  ;;  %v1915_v36 = vpack.c.bf16 %v1521_v54, %v1519_v29 }
 0x502   : > { %1914 = vmatprep.subr.msk.bf16.mxu1 %vm2611_vm5, %v1912_v17 }
 0x503   : > { %1917 = vmatpush1.bf16.msk.msra.mxu1 %vm2611_vm5, %v1915_v36 }
 0x506   : > { %1866 = vmatmul.mubr.msk.f32.vlgmr.msra.gmra.mrb[6].mxu1 %vm1058_vm12, %v1824_v41 }
 0x507   : > { %1605 = vmatprep.mubr.f32.mxu1 %v3032_v6 }
 0x50a   : > { %1867 = vmatmul.mubr.msk.f32.gmra.mrb[8].mxu1 %vm1058_vm12, %v1825_v50 }
 0x5d9   : > { %v1601_v57 = vpop.f32.mrb[6].mxu1 }
 0x5da   : > { %v1603_v16 = vpop.f32.mrb[7].mxu1 }
 0x5db   : > { %v1612_v28 = vadd.f32 %v1603_v16, %v1601_v57 }
 0x5dd   : > { %1613 = vadd.xlane.f32.xlu1 %v1612_v28  ;;  %v1607_v7 = vpop.f32.mrb[8].mxu1 }
 0x5de   : > { %v1615_v51 = vsel %vm244_vm0, %v1607_v7, 0.0  ;;  %v1609_v40 = vpop.f32.mrb[9].mxu1 }
 0x5df   : > { %v1616_v8 = vsel %vm244_vm0, %v1609_v40, 0.0 }
 0x5e0   : > { %v1617_v47 = vadd.f32 %v1616_v8, %v1615_v51 }
 0x5e2   : > { %1618 = vadd.xlane.f32.xlu0 %v1617_v47 }
 0x66a   : > { %v1614_v42 = vpop.xlane.xlu1 %1613 }
 0x66b   : > { %v1621_v2 = vmul.f32 0.00390625, %v1614_v42 }
 0x66d   : > { %v1623_v37 = vadd.f32 %v3033_v61, %v1621_v2 }
 0x66f   : > { %1627 = vperm.xlu1 %1995, %v1623_v37   ;;  %v1619_v18 = vpop.xlane.xlu0 %1618 }
 0x670   : > { %v1622_v19 = vmul.f32 0.00390625, %v1619_v18 }
 0x672   : > { %v1624_v63 = vadd.f32 %v2021_v15, %v1622_v19 }
 0x673   : > { %1997 = vset.pattern.permute.xlu1 %v2060_v56 }
 0x674   : > { %1632 = vperm.xlu0 %1996, %v1624_v63   ;;  %1640 = vperm.xlu1 %1997, %v3033_v61  }
 0x678   : > { %1999 = vset.pattern.permute.xlu0 %v2061_v25  ;;  %1644 = vperm.xlu1 %1997, %v2021_v15  }
 0x67c   : > { %1998 = vset.pattern.permute.xlu1 %v2061_v25 }
 0x67d   : > { %1737 = vperm.xlu1 %1998, %v3033_v61  }
 0x681   : > { %1741 = vperm.xlu1 %1998, %v2021_v15  }
 0x6ee   : > { %v1628_v46 = vpop.permute.xlu1 %1627 }
 0x6ef   : > { %v1635_v13 = vmul.f32 %v1628_v46, %v1519_v29  ;;  %v1636_v14 = vmul.f32 %v1628_v46, %v1520_v49 }
 0x6f3   : > { %v1633_v3 = vpop.permute.xlu0 %1632  ;;  %v1641_v21 = vpop.permute.xlu1 %1640 }
 0x6f4   : > { %v1637_v4 = vmul.f32 %v1633_v3, %v1521_v54  ;;  %v1638_v39 = vmul.f32 %v1633_v3, %v1522_v43 }
 0x6f6   : > { %v1918_v11 = vpack.c.bf16 %v1638_v39, %v1636_v14  ;;  %v1921_v48 = vpack.c.bf16 %v1637_v4, %v1635_v13 }
 0x6f7   : > { %v1645_v23 = vpop.permute.xlu1 %1644 }
 0x6f8   : > { %1920 = vmatprep.subr.msk.bf16.mxu0 %vm2611_vm5, %v1918_v11 }
 0x6f9   : > { %1923 = vmatpush1.bf16.msk.msra.mxu0 %vm2611_vm5, %v1921_v48 }
 0x6fc   : > { %1870 = vmatmul.mubr.msk.f32.vlgmr.msra.gmra.mrb[10].mxu0 %vm1058_vm12, %v1826_v26  ;;  %v1738_v9 = vpop.permute.xlu1 %1737 }
 0x6fd   : > { %1729 = vmatprep.mubr.f32.mxu0 %v3032_v6 }
 0x700   : > { %1871 = vmatmul.mubr.msk.f32.gmra.mrb[12].mxu0 %vm1058_vm12, %v1827_v27  ;;  %v1742_v53 = vpop.permute.xlu1 %1741 }
 0x7cf   : > { %v1725_v44 = vpop.f32.mrb[10].mxu0 }
 0x7d0   : > { %v1726_v45 = vadd.f32 %v1725_v44, %v1641_v21  ;;  %v1727_v38 = vpop.f32.mrb[11].mxu0 }
 0x7d1   : > { %v1728_v55 = vadd.f32 %v1727_v38, %v1641_v21 }
 0x7d2   : > { %v1744_v10 = vmul.f32 %v1738_v9, %v1726_v45 }
 0x7d3   : > { %v1745_v0 = vmul.f32 %v1738_v9, %v1728_v55  ;;  %v1731_v33 = vpop.f32.mrb[12].mxu0 }
 0x7d4   : > { %v1748_v20 = vadd.f32 %v1744_v10, %v3034_v5  ;;  %v1732_v60 = vadd.f32 %v1731_v33, %v1645_v23  ;;  %v1733_v1 = vpop.f32.mrb[13].mxu0 }
 0x7d5   : > { %v1749_v24 = vadd.f32 %v1745_v0, %v3035_v52  ;;  %v1734_v22 = vadd.f32 %v1733_v1, %v1645_v23 }
 0x7d6   : > { %1752 = vst [vmem:[%s197_s13] sm:$0xff] %v1748_v20  ;;  %v1746_v54 = vmul.f32 %v1742_v53, %v1732_v60 }
 0x7d7   : > { %1753 = vst [vmem:[%s197_s13 + $0x8] sm:$0xff] %v1749_v24  ;;  %v1747_v43 = vmul.f32 %v1742_v53, %v1734_v22 }
 0x7d8   : > { %v1750_v30 = vadd.f32 %v1746_v54, %v3036_v12 }
 0x7d9   : > { %v1751_v35 = vadd.f32 %v1747_v43, %v3037_v31 }
 0x7da   : > { %1754 = vst [vmem:[%s197_s13 + $0x10] sm:$0xf] %v1750_v30 }
 0x7db   : > { %1755 = vst [vmem:[%s197_s13 + $0x18] sm:$0xf] %v1751_v35 }
 0x7dc PF: > { %s14_s15 = sadd.s32 1, %s2028_s15  }
 0x7dd   : > { %p11_p4 = scmp.ge.s32.totalorder %s14_s15, 4  }
 0x7df   :  { %13 = sbr.rel (!%p11_p4) target bundleno = 1 (0x1), region = 71 }

</bundles_post_ra>
